<compile_context>
chip_gen: v6e
topology: v6e:2x2x1
jax: 0.10.0
libtpu: 0.0.40
codegen_flags: <defaults>
</compile_context>

<pallas_src>
import jax
import jax.numpy as jnp
import numpy as np
from jax.experimental import pallas as pl
from jax.experimental.pallas import tpu as pltpu


PADH = 8  # sublane-aligned halo size used for the in-kernel zero padding in H


# ---------------------------------------------------------------------------
# Fused kernel: conv1+relu -> conv2+relu -> avgpool -> fc, single invocation.
#   x_ref    : (B, H, W*Cin)  f32   NHWC input flattened to lane-dense rows
#   t1_ref   : (3, W*Cin, W*C1) bf16  banded conv1 weights (one per dy)
#   b1_ref   : (1, W*C1)      f32
#   t2_hbm   : (3*W*C1, W*C2) bf16  K-stacked conv2 weights, left in HBM (ANY)
#   b2_ref   : (1, W*C2)      f32
#   wfc_ref  : (W*C2, Nout)   f32   fc weight tiled across W, pre-scaled 1/(H*W)
#   bfc_ref  : (1, Nout)      f32
#   o_ref    : (B, Nout)      f32
#   scratches: xpad (B,H+16,W*Cin) f32, h1pad (B,H+16,W*C1) f32,
#              lhs2 (B,H,3*W*C1) f32, t2_vmem (3*W*C1,W*C2) bf16, DMA sem.
# ---------------------------------------------------------------------------
def fused_net_kernel(x_ref, t1_ref, b1_ref, t2_hbm, b2_ref, wfc_ref, bfc_ref,
                     o_ref, xpad_ref, h1pad_ref, lhs2_ref, t2_ref, sem):
    B, H, WCin = x_ref.shape
    WC1 = t1_ref.shape[2]
    WC2 = t2_ref.shape[1]

    # Kick off the conv2 weight DMA immediately; it overlaps with everything
    # up to (and including) the conv2 LHS staging below.
    t2_cp = pltpu.make_async_copy(t2_hbm, t2_ref, sem)
    t2_cp.start()

    # -- H-pad the input into VMEM scratch: zero only the halo blocks --------
    xpad_ref[:, :PADH, :] = jnp.zeros((B, PADH, WCin), jnp.float32)
    xpad_ref[:, PADH + H:2 * PADH + H, :] = jnp.zeros((B, PADH, WCin),
                                                      jnp.float32)
    xpad_ref[:, PADH:PADH + H, :] = x_ref[...]

    # -- conv1 + bias + relu: 3 small banded matmuls (K = W*Cin = 48) --------
    acc1 = None
    for dy in range(3):
        lhs = xpad_ref[:, PADH - 1 + dy:PADH - 1 + dy + H, :]
        lhs = lhs.reshape(B * H, WCin).astype(jnp.bfloat16)
        part = jnp.dot(lhs, t1_ref[dy], preferred_element_type=jnp.float32)
        acc1 = part if acc1 is None else acc1 + part
    h1 = jnp.maximum(acc1 + b1_ref[...], 0.0)            # (B*H, W*C1) f32

    # -- H-pad conv1 activations (halo-only zeroing) --------------------------
    h1pad_ref[:, :PADH, :] = jnp.zeros((B, PADH, WC1), jnp.float32)
    h1pad_ref[:, PADH + H:2 * PADH + H, :] = jnp.zeros((B, PADH, WC1),
                                                       jnp.float32)
    h1pad_ref[:, PADH:PADH + H, :] = h1.reshape(B, H, WC1)

    # -- stage the K-stacked conv2 LHS (lane offsets 0/256/512, all aligned) --
    # Still overlapped with the t2 DMA.
    for dy in range(3):
        lhs2_ref[:, :, dy * WC1:(dy + 1) * WC1] = \
            h1pad_ref[:, PADH - 1 + dy:PADH - 1 + dy + H, :]
    lhs2 = lhs2_ref[...].reshape(B * H, 3 * WC1).astype(jnp.bfloat16)

    # -- conv2 + bias + relu: ONE matmul with K = 3*W*C1 = 768 ----------------
    t2_cp.wait()
    h2 = jnp.maximum(
        jnp.dot(lhs2, t2_ref[...], preferred_element_type=jnp.float32)
        + b2_ref[...], 0.0)                               # (B*H, W*C2) f32

    # -- global avg pool + fc (pool folded into the tiled/scaled fc weight) --
    hsum = jnp.sum(h2.reshape(B, H, WC2), axis=1)         # (B, W*C2) f32
    o_ref[...] = (jnp.dot(hsum, wfc_ref[...],
                          preferred_element_type=jnp.float32) + bfc_ref[...])


# ---------------------------------------------------------------------------
# One-time weight preparation (hoisted out of the forward path).
# ---------------------------------------------------------------------------
def prepare_weights(params, H, W):
    """Builds the banded/Toeplitz-in-W conv weights, tiled biases and the
    pool-folded FC weight.  Depends only on params and the fixed spatial size,
    so it runs ONCE at init (not per forward)."""
    w1, b1 = params["w1"], params["b1"]          # (3,3,Cin,C1), (C1,)
    w2, b2 = params["w2"], params["b2"]          # (3,3,C1,C2), (C2,)
    w_fc, b_fc = params["w_fc"], params["b_fc"]  # (C2,Nout), (Nout,)
    Cin, C1 = w1.shape[2], w1.shape[3]
    C2 = w2.shape[3]
    Nout = w_fc.shape[1]

    # Clipped banded selector: S[d, w, x] = 1 iff input col w == output col
    # x + d - 1 ("same" padding along W is implicit in the clipping).
    dxs = np.arange(3)[:, None, None]
    wxs = np.arange(W)[None, :, None]
    xs = np.arange(W)[None, None, :]
    S = (wxs == xs + dxs - 1).astype(np.float32)                  # (3, W, W)

    t1 = jnp.einsum("dwx,ydco->ywcxo", S, w1).reshape(3, W * Cin, W * C1)
    t2 = jnp.einsum("dwx,ydco->ywcxo", S, w2).reshape(3 * W * C1, W * C2)

    return dict(
        t1=t1.astype(jnp.bfloat16),                      # (3, W*Cin, W*C1)
        b1=jnp.tile(b1, W).reshape(1, W * C1).astype(jnp.float32),
        t2=t2.astype(jnp.bfloat16),                      # (3*W*C1, W*C2)
        b2=jnp.tile(b2, W).reshape(1, W * C2).astype(jnp.float32),
        wfc=(jnp.tile(w_fc, (W, 1)) / float(H * W)).astype(jnp.float32),
        bfc=b_fc.reshape(1, Nout).astype(jnp.float32),
    )


# ---------------------------------------------------------------------------
# Forward: one tiny transpose for layout, then a single pallas_call.
# ---------------------------------------------------------------------------
@jax.jit
def simple_test_net_forward(x_nchw, prep):
    B, Cin, H, W = x_nchw.shape
    WC1 = prep["b1"].shape[1]
    WC2 = prep["b2"].shape[1]
    Nout = prep["bfc"].shape[1]

    # NCHW -> NHWC -> (B, H, W*Cin): channels fastest along the lane axis.
    x = jnp.transpose(x_nchw, (0, 2, 3, 1)).reshape(B, H, W * Cin)

    vmem = pl.BlockSpec(memory_space=pltpu.MemorySpace.VMEM)
    hbm = pl.BlockSpec(memory_space=pl.ANY)   # conv2 weight: manual async DMA
    return pl.pallas_call(
        fused_net_kernel,
        out_shape=jax.ShapeDtypeStruct((B, Nout), jnp.float32),
        in_specs=[vmem, vmem, vmem, hbm, vmem, vmem, vmem],
        out_specs=vmem,
        scratch_shapes=[
            pltpu.VMEM((B, H + 2 * PADH, W * Cin), jnp.float32),  # padded x
            pltpu.VMEM((B, H + 2 * PADH, WC1), jnp.float32),      # padded h1
            pltpu.VMEM((B, H, 3 * WC1), jnp.float32),             # conv2 LHS
            pltpu.VMEM((3 * WC1, WC2), jnp.bfloat16),             # conv2 W
            pltpu.SemaphoreType.DMA(()),
        ],
    )(x, prep["t1"], prep["b1"], prep["t2"], prep["b2"],
      prep["wfc"], prep["bfc"])


# ---------------------------------------------------------------------------
# Pure-JAX f32 reference (same NHWC/HWIO weight layout) for correctness.
# ---------------------------------------------------------------------------
def reference_forward(x_nchw, params):
    x = jnp.transpose(x_nchw, (0, 2, 3, 1))
    dn = jax.lax.conv_dimension_numbers(x.shape, params["w1"].shape,
                                        ("NHWC", "HWIO", "NHWC"))
    x = jax.lax.conv_general_dilated(x, params["w1"], (1, 1), "SAME",
                                     dimension_numbers=dn) + params["b1"]
    x = jnp.maximum(x, 0.0)
    dn = jax.lax.conv_dimension_numbers(x.shape, params["w2"].shape,
                                        ("NHWC", "HWIO", "NHWC"))
    x = jax.lax.conv_general_dilated(x, params["w2"], (1, 1), "SAME",
                                     dimension_numbers=dn) + params["b2"]
    x = jnp.maximum(x, 0.0)
    x = jnp.mean(x, axis=(1, 2))
    return x @ params["w_fc"] + params["b_fc"]


def init_params(key):
    """Deterministic synthetic weights matching the PyTorch module shapes
    (stored HWIO for the NHWC kernels; PyTorch would be OIHW)."""
    k1, k2, k3 = jax.random.split(key, 3)
    return {
        # conv1: Conv2d(3, 16, 3, padding=1)
        "w1": jax.random.normal(k1, (3, 3, 3, 16), jnp.float32) * 0.1,
        "b1": jnp.linspace(-0.1, 0.1, 16, dtype=jnp.float32),
        # conv2: Conv2d(16, 32, 3, padding=1)
        "w2": jax.random.normal(k2, (3, 3, 16, 32), jnp.float32) * 0.05,
        "b2": jnp.linspace(-0.05, 0.05, 32, dtype=jnp.float32),
        # fc: Linear(32, 10)
        "w_fc": jax.random.normal(k3, (32, 10), jnp.float32) * 0.1,
        "b_fc": jnp.linspace(-0.1, 0.1, 10, dtype=jnp.float32),
    }


if __name__ == "__main__":
    key = jax.random.PRNGKey(0)
    params = init_params(key)
    # Input consistent with SimpleTestNet: batch=2, 3 channels, 16x16 spatial.
    x = jax.random.normal(jax.random.fold_in(key, 7), (2, 3, 16, 16),
                          jnp.float32)

    # One-time weight prep (hoisted out of the forward; not timed per call).
    prep = prepare_weights(params, H=16, W=16)
    prep = jax.tree_util.tree_map(jax.block_until_ready, prep)

    out = jax.block_until_ready(simple_test_net_forward(x, prep))
    ref = jax.block_until_ready(reference_forward(x, params))

    assert out.shape == (2, 10), out.shape
    # bf16 conv weights / LHS (f32 accumulation) -> loosened tolerance.
    np.testing.assert_allclose(np.asarray(out), np.asarray(ref),
                               rtol=2e-2, atol=2e-2)
    print("KERNEL_OK")
</pallas_src>

<mosaic_0001>
module attributes {stable_mosaic.version = 11 : i64} {
  func.func @fused_net_kernel(%arg0: memref<2x16x48xf32, #tpu.memory_space<vmem>>, %arg1: memref<3x48x256xbf16, #tpu.memory_space<vmem>>, %arg2: memref<1x256xf32, #tpu.memory_space<vmem>>, %arg3: memref<768x512xbf16, #tpu.memory_space<any>>, %arg4: memref<1x512xf32, #tpu.memory_space<vmem>>, %arg5: memref<512x10xf32, #tpu.memory_space<vmem>>, %arg6: memref<1x10xf32, #tpu.memory_space<vmem>>, %arg7: memref<2x10xf32, #tpu.memory_space<vmem>>, %arg8: memref<2x32x48xf32, #tpu.memory_space<vmem>>, %arg9: memref<2x32x256xf32, #tpu.memory_space<vmem>>, %arg10: memref<2x16x768xf32, #tpu.memory_space<vmem>>, %arg11: memref<768x512xbf16, #tpu.memory_space<vmem>>, %arg12: memref<!tpu.dma_semaphore, #tpu.memory_space<semaphore_mem>>) attributes {dimension_semantics = [], scalar_prefetch = 0 : i64, scratch_operands = 5 : i64, tpu.core_type = #tpu.core_type<tc>} {
    tpu.enqueue_dma source(%arg3 : memref<768x512xbf16, #tpu.memory_space<any>>) target(%arg11 : memref<768x512xbf16, #tpu.memory_space<vmem>>) target_semaphore(%arg12 : memref<!tpu.dma_semaphore, #tpu.memory_space<semaphore_mem>>)
    %cst = arith.constant 0.000000e+00 : f32
    %0 = vector.broadcast %cst : f32 to vector<2x8x48xf32>
    %c0 = arith.constant 0 : index
    %c0_0 = arith.constant 0 : index
    %c0_1 = arith.constant 0 : index
    %1 = vector.load %arg8[%c0, %c0_0, %c0_1] : memref<2x32x48xf32, #tpu.memory_space<vmem>>, vector<2x8x48xf32>
    tpu.vector_store %arg8[%c0, %c0_0, %c0_1], %0 {strides = array<i32>} : memref<2x32x48xf32, #tpu.memory_space<vmem>>, vector<2x8x48xf32>,
    %cst_2 = arith.constant 0.000000e+00 : f32
    %2 = vector.broadcast %cst_2 : f32 to vector<2x8x48xf32>
    %c0_3 = arith.constant 0 : index
    %c24 = arith.constant 24 : index
    %c0_4 = arith.constant 0 : index
    %3 = vector.load %arg8[%c0_3, %c24, %c0_4] : memref<2x32x48xf32, #tpu.memory_space<vmem>>, vector<2x8x48xf32>
    tpu.vector_store %arg8[%c0_3, %c24, %c0_4], %2 {strides = array<i32>} : memref<2x32x48xf32, #tpu.memory_space<vmem>>, vector<2x8x48xf32>,
    %c0_5 = arith.constant 0 : index
    %c0_6 = arith.constant 0 : index
    %c0_7 = arith.constant 0 : index
    %4 = vector.load %arg0[%c0_5, %c0_6, %c0_7] : memref<2x16x48xf32, #tpu.memory_space<vmem>>, vector<2x16x48xf32>
    %c0_8 = arith.constant 0 : index
    %c8 = arith.constant 8 : index
    %c0_9 = arith.constant 0 : index
    %5 = vector.load %arg8[%c0_8, %c8, %c0_9] : memref<2x32x48xf32, #tpu.memory_space<vmem>>, vector<2x16x48xf32>
    tpu.vector_store %arg8[%c0_8, %c8, %c0_9], %4 {strides = array<i32>} : memref<2x32x48xf32, #tpu.memory_space<vmem>>, vector<2x16x48xf32>,
    %c0_10 = arith.constant 0 : index
    %c7 = arith.constant 7 : index
    %c0_11 = arith.constant 0 : index
    %6 = vector.load %arg8[%c0_10, %c7, %c0_11] : memref<2x32x48xf32, #tpu.memory_space<vmem>>, vector<2x16x48xf32>
    %7 = vector.shape_cast %6 : vector<2x16x48xf32> to vector<32x48xf32>
    %8 = arith.truncf %7 : vector<32x48xf32> to vector<32x48xbf16>
    %c0_12 = arith.constant 0 : index
    %c0_13 = arith.constant 0 : index
    %c0_14 = arith.constant 0 : index
    %9 = vector.load %arg1[%c0_12, %c0_13, %c0_14] : memref<3x48x256xbf16, #tpu.memory_space<vmem>>, vector<1x48x256xbf16>
    %10 = vector.shape_cast %9 : vector<1x48x256xbf16> to vector<48x256xbf16>
    %cst_15 = arith.constant dense<0.000000e+00> : vector<32x256xf32>
    %11 = tpu.matmul %8, %10, %cst_15 {dimension_numbers = #tpu.dot_dimension_numbers<[1], [0], [0], [1], [0, 0, 1, 1], [], []>} : vector<32x48xbf16>, vector<48x256xbf16>, vector<32x256xf32> -> vector<32x256xf32>
    %c0_16 = arith.constant 0 : index
    %c8_17 = arith.constant 8 : index
    %c0_18 = arith.constant 0 : index
    %12 = vector.load %arg8[%c0_16, %c8_17, %c0_18] : memref<2x32x48xf32, #tpu.memory_space<vmem>>, vector<2x16x48xf32>
    %13 = vector.shape_cast %12 : vector<2x16x48xf32> to vector<32x48xf32>
    %14 = arith.truncf %13 : vector<32x48xf32> to vector<32x48xbf16>
    %c1 = arith.constant 1 : index
    %c0_19 = arith.constant 0 : index
    %c0_20 = arith.constant 0 : index
    %15 = vector.load %arg1[%c1, %c0_19, %c0_20] : memref<3x48x256xbf16, #tpu.memory_space<vmem>>, vector<1x48x256xbf16>
    %16 = vector.shape_cast %15 : vector<1x48x256xbf16> to vector<48x256xbf16>
    %cst_21 = arith.constant dense<0.000000e+00> : vector<32x256xf32>
    %17 = tpu.matmul %14, %16, %cst_21 {dimension_numbers = #tpu.dot_dimension_numbers<[1], [0], [0], [1], [0, 0, 1, 1], [], []>} : vector<32x48xbf16>, vector<48x256xbf16>, vector<32x256xf32> -> vector<32x256xf32>
    %18 = arith.addf %11, %17 : vector<32x256xf32>
    %c0_22 = arith.constant 0 : index
    %c9 = arith.constant 9 : index
    %c0_23 = arith.constant 0 : index
    %19 = vector.load %arg8[%c0_22, %c9, %c0_23] : memref<2x32x48xf32, #tpu.memory_space<vmem>>, vector<2x16x48xf32>
    %20 = vector.shape_cast %19 : vector<2x16x48xf32> to vector<32x48xf32>
    %21 = arith.truncf %20 : vector<32x48xf32> to vector<32x48xbf16>
    %c2 = arith.constant 2 : index
    %c0_24 = arith.constant 0 : index
    %c0_25 = arith.constant 0 : index
    %22 = vector.load %arg1[%c2, %c0_24, %c0_25] : memref<3x48x256xbf16, #tpu.memory_space<vmem>>, vector<1x48x256xbf16>
    %23 = vector.shape_cast %22 : vector<1x48x256xbf16> to vector<48x256xbf16>
    %cst_26 = arith.constant dense<0.000000e+00> : vector<32x256xf32>
    %24 = tpu.matmul %21, %23, %cst_26 {dimension_numbers = #tpu.dot_dimension_numbers<[1], [0], [0], [1], [0, 0, 1, 1], [], []>} : vector<32x48xbf16>, vector<48x256xbf16>, vector<32x256xf32> -> vector<32x256xf32>
    %25 = arith.addf %18, %24 : vector<32x256xf32>
    %c0_27 = arith.constant 0 : index
    %c0_28 = arith.constant 0 : index
    %26 = vector.load %arg2[%c0_27, %c0_28] : memref<1x256xf32, #tpu.memory_space<vmem>>, vector<1x256xf32>
    %27 = vector.broadcast %26 : vector<1x256xf32> to vector<32x256xf32>
    %28 = arith.addf %25, %27 : vector<32x256xf32>
    %cst_29 = arith.constant 0.000000e+00 : f32
    %29 = vector.broadcast %cst_29 : f32 to vector<32x256xf32>
    %30 = arith.maximumf %28, %29 : vector<32x256xf32>
    %cst_30 = arith.constant 0.000000e+00 : f32
    %31 = vector.broadcast %cst_30 : f32 to vector<2x8x256xf32>
    %c0_31 = arith.constant 0 : index
    %c0_32 = arith.constant 0 : index
    %c0_33 = arith.constant 0 : index
    %32 = vector.load %arg9[%c0_31, %c0_32, %c0_33] : memref<2x32x256xf32, #tpu.memory_space<vmem>>, vector<2x8x256xf32>
    tpu.vector_store %arg9[%c0_31, %c0_32, %c0_33], %31 {strides = array<i32>} : memref<2x32x256xf32, #tpu.memory_space<vmem>>, vector<2x8x256xf32>,
    %cst_34 = arith.constant 0.000000e+00 : f32
    %33 = vector.broadcast %cst_34 : f32 to vector<2x8x256xf32>
    %c0_35 = arith.constant 0 : index
    %c24_36 = arith.constant 24 : index
    %c0_37 = arith.constant 0 : index
    %34 = vector.load %arg9[%c0_35, %c24_36, %c0_37] : memref<2x32x256xf32, #tpu.memory_space<vmem>>, vector<2x8x256xf32>
    tpu.vector_store %arg9[%c0_35, %c24_36, %c0_37], %33 {strides = array<i32>} : memref<2x32x256xf32, #tpu.memory_space<vmem>>, vector<2x8x256xf32>,
    %35 = vector.shape_cast %30 : vector<32x256xf32> to vector<2x16x256xf32>
    %c0_38 = arith.constant 0 : index
    %c8_39 = arith.constant 8 : index
    %c0_40 = arith.constant 0 : index
    %36 = vector.load %arg9[%c0_38, %c8_39, %c0_40] : memref<2x32x256xf32, #tpu.memory_space<vmem>>, vector<2x16x256xf32>
    tpu.vector_store %arg9[%c0_38, %c8_39, %c0_40], %35 {strides = array<i32>} : memref<2x32x256xf32, #tpu.memory_space<vmem>>, vector<2x16x256xf32>,
    %c0_41 = arith.constant 0 : index
    %c7_42 = arith.constant 7 : index
    %c0_43 = arith.constant 0 : index
    %37 = vector.load %arg9[%c0_41, %c7_42, %c0_43] : memref<2x32x256xf32, #tpu.memory_space<vmem>>, vector<2x16x256xf32>
    %c0_44 = arith.constant 0 : index
    %c0_45 = arith.constant 0 : index
    %c0_46 = arith.constant 0 : index
    %38 = vector.load %arg10[%c0_44, %c0_45, %c0_46] : memref<2x16x768xf32, #tpu.memory_space<vmem>>, vector<2x16x256xf32>
    tpu.vector_store %arg10[%c0_44, %c0_45, %c0_46], %37 {strides = array<i32>} : memref<2x16x768xf32, #tpu.memory_space<vmem>>, vector<2x16x256xf32>,
    %c0_47 = arith.constant 0 : index
    %c8_48 = arith.constant 8 : index
    %c0_49 = arith.constant 0 : index
    %39 = vector.load %arg9[%c0_47, %c8_48, %c0_49] : memref<2x32x256xf32, #tpu.memory_space<vmem>>, vector<2x16x256xf32>
    %c0_50 = arith.constant 0 : index
    %c0_51 = arith.constant 0 : index
    %c256 = arith.constant 256 : index
    %40 = vector.load %arg10[%c0_50, %c0_51, %c256] : memref<2x16x768xf32, #tpu.memory_space<vmem>>, vector<2x16x256xf32>
    tpu.vector_store %arg10[%c0_50, %c0_51, %c256], %39 {strides = array<i32>} : memref<2x16x768xf32, #tpu.memory_space<vmem>>, vector<2x16x256xf32>,
    %c0_52 = arith.constant 0 : index
    %c9_53 = arith.constant 9 : index
    %c0_54 = arith.constant 0 : index
    %41 = vector.load %arg9[%c0_52, %c9_53, %c0_54] : memref<2x32x256xf32, #tpu.memory_space<vmem>>, vector<2x16x256xf32>
    %c0_55 = arith.constant 0 : index
    %c0_56 = arith.constant 0 : index
    %c512 = arith.constant 512 : index
    %42 = vector.load %arg10[%c0_55, %c0_56, %c512] : memref<2x16x768xf32, #tpu.memory_space<vmem>>, vector<2x16x256xf32>
    tpu.vector_store %arg10[%c0_55, %c0_56, %c512], %41 {strides = array<i32>} : memref<2x16x768xf32, #tpu.memory_space<vmem>>, vector<2x16x256xf32>,
    %c0_57 = arith.constant 0 : index
    %c0_58 = arith.constant 0 : index
    %c0_59 = arith.constant 0 : index
    %43 = vector.load %arg10[%c0_57, %c0_58, %c0_59] : memref<2x16x768xf32, #tpu.memory_space<vmem>>, vector<2x16x768xf32>
    %44 = vector.shape_cast %43 : vector<2x16x768xf32> to vector<32x768xf32>
    %45 = arith.truncf %44 : vector<32x768xf32> to vector<32x768xbf16>
    tpu.wait_dma2 semaphore(%arg12 : memref<!tpu.dma_semaphore, #tpu.memory_space<semaphore_mem>>) src(%arg3 : memref<768x512xbf16, #tpu.memory_space<any>>) dst(%arg11 : memref<768x512xbf16, #tpu.memory_space<vmem>>)
    %c0_60 = arith.constant 0 : index
    %c0_61 = arith.constant 0 : index
    %46 = vector.load %arg11[%c0_60, %c0_61] : memref<768x512xbf16, #tpu.memory_space<vmem>>, vector<768x512xbf16>
    %cst_62 = arith.constant dense<0.000000e+00> : vector<32x512xf32>
    %47 = tpu.matmul %45, %46, %cst_62 {dimension_numbers = #tpu.dot_dimension_numbers<[1], [0], [0], [1], [0, 0, 1, 1], [], []>} : vector<32x768xbf16>, vector<768x512xbf16>, vector<32x512xf32> -> vector<32x512xf32>
    %c0_63 = arith.constant 0 : index
    %c0_64 = arith.constant 0 : index
    %48 = vector.load %arg4[%c0_63, %c0_64] : memref<1x512xf32, #tpu.memory_space<vmem>>, vector<1x512xf32>
    %49 = vector.broadcast %48 : vector<1x512xf32> to vector<32x512xf32>
    %50 = arith.addf %47, %49 : vector<32x512xf32>
    %cst_65 = arith.constant 0.000000e+00 : f32
    %51 = vector.broadcast %cst_65 : f32 to vector<32x512xf32>
    %52 = arith.maximumf %50, %51 : vector<32x512xf32>
    %53 = vector.shape_cast %52 : vector<32x512xf32> to vector<2x16x512xf32>
    %cst_66 = arith.constant dense<0.000000e+00> : vector<2x512xf32>
    %54 = vector.multi_reduction <add>, %53, %cst_66 [1] : vector<2x16x512xf32> to vector<2x512xf32>
    %c0_67 = arith.constant 0 : index
    %c0_68 = arith.constant 0 : index
    %55 = vector.load %arg5[%c0_67, %c0_68] : memref<512x10xf32, #tpu.memory_space<vmem>>, vector<512x10xf32>
    %cst_69 = arith.constant dense<0.000000e+00> : vector<2x10xf32>
    %56 = tpu.matmul %54, %55, %cst_69 {dimension_numbers = #tpu.dot_dimension_numbers<[1], [0], [0], [1], [0, 0, 1, 1], [], []>} : vector<2x512xf32>, vector<512x10xf32>, vector<2x10xf32> -> vector<2x10xf32>
    %c0_70 = arith.constant 0 : index
    %c0_71 = arith.constant 0 : index
    %57 = vector.load %arg6[%c0_70, %c0_71] : memref<1x10xf32, #tpu.memory_space<vmem>>, vector<1x10xf32>
    %58 = vector.broadcast %57 : vector<1x10xf32> to vector<2x10xf32>
    %59 = arith.addf %56, %58 : vector<2x10xf32>
    %c0_72 = arith.constant 0 : index
    %c0_73 = arith.constant 0 : index
    %60 = vector.load %arg7[%c0_72, %c0_73] : memref<2x10xf32, #tpu.memory_space<vmem>>, vector<2x10xf32>
    tpu.vector_store %arg7[%c0_72, %c0_73], %59 {strides = array<i32>} : memref<2x10xf32, #tpu.memory_space<vmem>>, vector<2x10xf32>,
    return
  }
}

</mosaic_0001>

<bundles_post_ra>
// kernel: simple_test_net_forward.1
= control target key start
LH: loop header
LB: loop body
LE: loop exit
PB: predicated region body
PF: predicated region fallthrough
CT: control target
= control target key end

     0   :  { %vm37_vm0 = vcmask 392192   ;;  %v3062_v2 = vmov 0   ;;  %v3063_v5 = vmov 0.0   ;;  %s3502_s0 = inlined_call_operand.vmem [shape: f32[2,16,48], index: 0, kind: input, shape index: {}]   ;;  %s3503_s1 = inlined_call_operand.vmem [shape: bf16[3,48,256], index: 1, kind: input, shape index: {}]   ;;  %s3504_s2 = inlined_call_operand.vmem [shape: f32[1,256], index: 2, kind: input, shape index: {}]   ;;  %s3505_s3 = inlined_call_operand.hbm [shape: bf16[768,512], index: 3, kind: input, shape index: {}]   ;;  %s3506_s4 = inlined_call_operand.vmem [shape: f32[1,512], index: 4, kind: input, shape index: {}]   ;;  %s3507_s5 = inlined_call_operand.vmem [shape: f32[512,10], index: 5, kind: input, shape index: {}]   ;;  %s3508_s6 = inlined_call_operand.vmem [shape: f32[1,10], index: 6, kind: input, shape index: {}]   ;;  %s3509_s7 = inlined_call_operand.hbm [shape: f32[2,10], index: 7, kind: output, shape index: {}]  }
   0x1   :  { %v2703_v0 = vld [vmem:[%s3503_s1 + $0x54] ss:$8 sps:$4 sm:$0xff]   ;;  %v2705_v1 = vld [vmem:[%s3503_s1 + $0x24] ss:$8 sps:$4 sm:$0xff]   ;;  %143 = vmatprep.mubr.bf16.mxu0 %v3062_v2  ;;  %232 = vmatprep.mubr.bf16.mxu1 %v3062_v2  ;;  %v2707_v3 = vld [vmem:[%s3503_s1 + $0x50] ss:$8 sps:$4 sm:$0xff]  }
   0x2   :  { %121 = vmatprep.subr.bf16.mxu0 %v2703_v0  ;;  %v2708_v4 = vld [vmem:[%s3503_s1 + $0x20] ss:$8 sps:$4 sm:$0xff]   ;;  %38 = vst.msk [vmem:[#allocation2] sm:$0xff] %vm37_vm0, %v3063_v5  ;;  %39 = vst.msk [vmem:[#allocation2 + $0x20] sm:$0xff] %vm37_vm0, %v3063_v5  ;;  %210 = vmatprep.subr.bf16.mxu1 %v2705_v1  ;;  %v2709_v6 = vld [vmem:[%s3503_s1 + $0x44] ss:$8 sps:$4 sm:$0xff]  }
   0x3   :  { %40 = vst.msk [vmem:[#allocation2 + $0x18] sm:$0xff] %vm37_vm0, %v3063_v5  ;;  %41 = vst.msk [vmem:[#allocation2 + $0x38] sm:$0xff] %vm37_vm0, %v3063_v5  ;;  %122 = vmatpush1.bf16.msra.mxu0 %v2707_v3  ;;  %211 = vmatpush1.bf16.msra.mxu1 %v2708_v4  ;;  %v2711_v7 = vld [vmem:[%s3503_s1 + $0x14] ss:$8 sps:$4 sm:$0xff]   ;;  %v2713_v8 = vld [vmem:[%s3503_s1 + $0x40] ss:$8 sps:$4 sm:$0xff]  }
   0x4   :  { %391 = vst [vmem:[#allocation3 + $0x70] sm:$0xff] %v3063_v5  ;;  %392 = vst [vmem:[#allocation3] sm:$0xff] %v3063_v5  ;;  %123 = vmatprep.subr.bf16.mxu0 %v2709_v6  ;;  %v2714_v9 = vld [vmem:[%s3503_s1 + $0x10] ss:$8 sps:$4 sm:$0xff]   ;;  %212 = vmatprep.subr.bf16.mxu1 %v2711_v7  ;;  %v2715_v10 = vld [vmem:[%s3503_s1 + $0x34] ss:$8 sps:$4 sm:$0xff]  }
   0x5   :  { %393 = vst [vmem:[#allocation3 + $0x28] sm:$0xff] %v3063_v5  ;;  %394 = vst [vmem:[#allocation3 + $0x48] sm:$0xff] %v3063_v5  ;;  %v2717_v11 = vld [vmem:[%s3503_s1 + $0x4] ss:$8 sps:$4 sm:$0xff]   ;;  %v2719_v12 = vld [vmem:[%s3503_s1 + $0x30] ss:$8 sps:$4 sm:$0xff]  }
   0x6   :  { %395 = vst [vmem:[#allocation3 + $0x20] sm:$0xff] %v3063_v5  ;;  %396 = vst [vmem:[#allocation3 + $0x58] sm:$0xff] %v3063_v5  ;;  %v2720_v13 = vld [vmem:[%s3503_s1] ss:$8 sps:$4 sm:$0xff]   ;;  %v2723_v16 = vld [vmem:[%s3503_s1 + $0x84] ss:$8 sps:$4 sm:$0xff]  }
   0x7   :  { %397 = vst [vmem:[#allocation3 + $0x8] sm:$0xff] %v3063_v5  ;;  %398 = vst [vmem:[#allocation3 + $0x18] sm:$0xff] %v3063_v5  ;;  %124 = vmatpush1.bf16.msra.mxu0 %v2713_v8  ;;  %213 = vmatpush1.bf16.msra.mxu1 %v2714_v9  ;;  %v42_v14 = vld [vmem:[%s3502_s0] sm:$0xff]  ;;  %v43_v15 = vld [vmem:[%s3502_s0 + $0x8] sm:$0xff] }
   0x8   :  { %125 = vmatprep.subr.bf16.mxu0 %v2715_v10  ;;  %214 = vmatprep.subr.bf16.mxu1 %v2717_v11  ;;  %46 = vst.msk [vmem:[#allocation2 + $0x8] sm:$0xff] %vm37_vm0, %v42_v14  ;;  %47 = vst.msk [vmem:[#allocation2 + $0x10] sm:$0xff] %vm37_vm0, %v43_v15  ;;  %v44_v17 = vld [vmem:[%s3502_s0 + $0x10] sm:$0xff]  ;;  %v45_v18 = vld [vmem:[%s3502_s0 + $0x18] sm:$0xff] }
   0x9   :  { %48 = vst.msk [vmem:[#allocation2 + $0x28] sm:$0xff] %vm37_vm0, %v44_v17  ;;  %49 = vst.msk [vmem:[#allocation2 + $0x30] sm:$0xff] %vm37_vm0, %v45_v18 }
   0xb   :  { %126 = vmatpush1.bf16.msra.mxu0 %v2719_v12  ;;  %215 = vmatpush1.bf16.msra.mxu1 %v2720_v13 }
   0xc   :  { %312 = vmatprep.subr.bf16.mxu0 %v2723_v16 }
   0xd   :  { %12 = vsyncpa [#allocation8], 0  ;;  %v2721_v19 = vld [vmem:[%s3503_s1 + $0x80] ss:$8 sps:$4 sm:$0xff]   ;;  %v2726_v25 = vld [vmem:[%s3503_s1 + $0x74] ss:$8 sps:$4 sm:$0xff]  }
   0xe   :  { %v2724_v27 = vld [vmem:[%s3503_s1 + $0x70] ss:$8 sps:$4 sm:$0xff]   ;;  %v2729_v32 = vld [vmem:[%s3503_s1 + $0x64] ss:$8 sps:$4 sm:$0xff]   ;;  %v2727_v35 = vld [vmem:[%s3503_s1 + $0x60] ss:$8 sps:$4 sm:$0xff]  }
   0xf   :  { %v62_v20 = vld [vmem:[#allocation2 + $0x8] sm:$0xff]  ;;  %v63_v21 = vld [vmem:[#allocation2 + $0x10] sm:$0xff]  ;;  %s3064_s1 = smov [#allocation5]  }
  0x10   :  { %v50_v22 = vld [vmem:[#allocation2 + $0x7] sm:$0xff]  ;;  %v66_v23 = vpack.c.bf16 %v63_v21, %v62_v20  ;;  %v51_v24 = vld [vmem:[#allocation2 + $0xf] sm:$0xff]  ;;  %s33_s21 = sshll.u32 %s3064_s1, 4  ;;  %s34_s21 = int_to_ptr.vmem [resolvable:$true] %s33_s21 }
  0x11   :  { %v54_v26 = vpack.c.bf16 %v51_v24, %v50_v22  ;;  %v64_v28 = vld [vmem:[#allocation2 + $0x28] sm:$0xff]  ;;  %v65_v29 = vld [vmem:[#allocation2 + $0x30] sm:$0xff]  ;;  %s3026_s22 = scalar_lea.vmem %s34_s21, 24576  ;;  %p3031_p1 = scmp.lt.s32.totalorder %s34_s21, %s34_s21 }
  0x12   :  { %2411 = vmatmul.mubr.msk.bf16.vlgmr.msra.gmra.mxu0 %vm37_vm0, %v66_v23  ;;  %v52_v30 = vld [vmem:[#allocation2 + $0x27] sm:$0xff]  ;;  %v53_v31 = vld [vmem:[#allocation2 + $0x2f] sm:$0xff]  ;;  %v67_v33 = vpack.c.bf16 %v65_v29, %v64_v28  ;;  %p3027_p0 = scmp.ne.s32.totalorder %s34_s21, %s3026_s22  ;;  %p3032_p2 = scmp.lt.s32.totalorder %s3026_s22, %s3026_s22 }
  0x13   :  { %2419 = vmatmul.mubr.msk.bf16.vlgmr.msra.gmra.mxu1 %vm37_vm0, %v54_v26  ;;  %313 = vmatpush1.bf16.msra.mxu0 %v2721_v19  ;;  %v55_v34 = vpack.c.bf16 %v53_v31, %v52_v30  ;;  %v253_v36 = vld [vmem:[#allocation2 + $0x9] sm:$0xff]  ;;  %v254_v37 = vld [vmem:[#allocation2 + $0x11] sm:$0xff] }
  0x14   :  { %314 = vmatprep.subr.bf16.mxu0 %v2726_v25  ;;  %153 = vmatprep.mubr.bf16.mxu0 %v3062_v2  ;;  %v257_v38 = vpack.c.bf16 %v254_v37, %v253_v36  ;;  %v255_v39 = vld [vmem:[#allocation2 + $0x29] sm:$0xff]  ;;  %v256_v40 = vld [vmem:[#allocation2 + $0x31] sm:$0xff]  ;;  %p3033_p3 = por %p3032_p2, %p3031_p1 }
  0x15   :  { %242 = vmatprep.mubr.bf16.mxu1 %v3062_v2  ;;  %v258_v41 = vpack.c.bf16 %v256_v40, %v255_v39 }
  0x16   :  { %p3034_p4 = pnand %p3033_p3, %p3027_p0 }
  0x17   :  { %315 = vmatpush1.bf16.msra.mxu0 %v2724_v27 }
  0x18   :  { %316 = vmatprep.subr.bf16.mxu0 %v2729_v32 }
  0x1a   :  { %2412 = vmatmul.mubr.msk.bf16.gmra.mxu0 %vm37_vm0, %v67_v33 }
  0x1b   :  { %2420 = vmatmul.mubr.msk.bf16.gmra.mxu1 %vm37_vm0, %v55_v34  ;;  %317 = vmatpush1.bf16.msra.mxu0 %v2727_v35 }
  0x1c   :  { %334 = vmatprep.mubr.bf16.mxu0 %v3062_v2 }
  0x22   :  { %2433 = vmatmul.mubr.msk.bf16.vlgmr.msra.gmra.mxu0 %vm37_vm0, %v257_v38 }
  0x23   :  { %344 = vmatprep.mubr.bf16.mxu0 %v3062_v2 }
  0x2a   :  { %2434 = vmatmul.mubr.msk.bf16.gmra.mxu0 %vm37_vm0, %v258_v41 }
  0x2b   :  { %3037 = shalt.err (!%p3034_p4)  }
  0x2c   :  { %36 = dma.hbm_to_vmem [thread:$0]  %s3505_s3, 24576, %s34_s21, [#allocation6]  ;;  %v365_v46 = vlaneseq  ;;  %v363_v56 = vld [vmem:[%s3504_s2] sm:$0x3]  ;;  %v489_v29 = vld [vmem:[#allocation3 + $0x58] sm:$0x1] }
  0x2d   :  { %v488_v20 = vld [vmem:[#allocation3 + $0x20] sm:$0x1]  ;;  %v407_v36 = vld [vmem:[#allocation3 + $0x70] sm:$0x80]  ;;  %vm508_vm1 = vcmask 1046528   ;;  %v517_v40 = vrot.slane %v489_v29, 1 }
  0x2e   :  { %v3195_v50 = vshrl.u32 %v365_v46, 7  ;;  %v515_v31 = vrot.slane %v488_v20, 1  ;;  %vm431_vm2 = vcmask 1040384  }
  0x30   :  { %v367_v54 = vsub.s32 0, %v3195_v50  ;;  %v371_v57 = vsub.s32 1, %v3195_v50 }
  0x32   :  { %v368_v61 = vrot.slane %v363_v56, %v367_v54  ;;  %v372_v1 = vrot.slane %v363_v56, %v371_v57 }
  0xd2   :  { %v145_v42 = vpop.f32.mrf.mxu0 }
  0xd3   :  { %v234_v43 = vpop.f32.mrf.mxu1 }
  0xd4   :  { %v147_v44 = vpop.f32.mrf.mxu0  ;;  %v235_v60 = vadd.f32 %v234_v43, %v145_v42 }
  0xd5   :  { %v236_v45 = vpop.f32.mrf.mxu1 }
  0xd6   :  { %v149_v47 = vpop.f32.mrf.mxu0  ;;  %v237_v63 = vadd.f32 %v236_v45, %v147_v44  ;;  %v408_v45 = vld [vmem:[#allocation3] sm:$0x80] }
  0xd7   :  { %v238_v48 = vpop.f32.mrf.mxu1 }
  0xd8   :  { %v151_v49 = vpop.f32.mrf.mxu0  ;;  %v239_v4 = vadd.f32 %v238_v48, %v149_v47 }
  0xd9   :  { %v240_v52 = vpop.f32.mrf.mxu1 }
  0xda   :  { %v155_v51 = vpop.f32.mrf.mxu0  ;;  %v241_v8 = vadd.f32 %v240_v52, %v151_v49  ;;  %v432_v49 = vrot.slane %v407_v36, 7 }
  0xdb   :  { %v244_v58 = vpop.f32.mrf.mxu1 }
  0xdc   :  { %v157_v53 = vpop.f32.mrf.mxu0  ;;  %v245_v17 = vadd.f32 %v244_v58, %v155_v51 }
  0xdd   :  { %v246_v2 = vpop.f32.mrf.mxu1 }
  0xde   :  { %v159_v55 = vpop.f32.mrf.mxu0  ;;  %v247_v22 = vadd.f32 %v246_v2, %v157_v53 }
  0xdf   :  { %v248_v12 = vpop.f32.mrf.mxu1 }
  0xe0   :  { %v161_v59 = vpop.f32.mrf.mxu0  ;;  %v249_v26 = vadd.f32 %v248_v12, %v159_v55  ;;  %v495_v12 = vld [vmem:[#allocation3 + $0x18] sm:$0x1] }
  0xe1   :  { %v250_v23 = vpop.f32.mrf.mxu1 }
  0xe2   :  { %v336_v62 = vpop.f32.mrf.mxu0  ;;  %v251_v35 = vadd.f32 %v250_v23, %v161_v59 }
  0xe3   :  { %v355_v0 = vadd.f32 %v336_v62, %v235_v60  ;;  %v435_v62 = vrot.slane %v408_v45, 7 }
  0xe4   :  { %v338_v3 = vpop.f32.mrf.mxu0 }
  0xe5   :  { %v375_v5 = vadd.f32 %v368_v61, %v355_v0  ;;  %v356_v6 = vadd.f32 %v338_v3, %v237_v63 }
  0xe6   :  { %v340_v7 = vpop.f32.mrf.mxu0 }
  0xe7   :  { %v3206_v9 = vmax.f32 %v375_v5, 0.0  ;;  %v376_v10 = vadd.f32 %v372_v1, %v356_v6  ;;  %v357_v11 = vadd.f32 %v340_v7, %v239_v4  ;;  %v494_v5 = vld [vmem:[#allocation3 + $0x8] sm:$0x1] }
  0xe8   :  { %v342_v13 = vpop.f32.mrf.mxu0 }
  0xe9   :  { %399 = vst [vmem:[#allocation3 + $0x10] sm:$0xff] %v3206_v9  ;;  %v3209_v14 = vmax.f32 %v376_v10, 0.0  ;;  %v377_v15 = vadd.f32 %v368_v61, %v357_v11  ;;  %v358_v16 = vadd.f32 %v342_v13, %v241_v8  ;;  %v433_v51 = vrot.slane %v3206_v9, 7 }
  0xea   :  { %v346_v18 = vpop.f32.mrf.mxu0 }
  0xeb   :  { %400 = vst [vmem:[#allocation3 + $0x30] sm:$0xff] %v3209_v14  ;;  %v385_v19 = vmax.f32 %v377_v15, 0.0  ;;  %v378_v21 = vadd.f32 %v372_v1, %v358_v16  ;;  %v359_v24 = vadd.f32 %v346_v18, %v245_v17  ;;  %v436_v63 = vrot.slane %v3209_v14, 7 }
  0xec   :  { %v348_v25 = vpop.f32.mrf.mxu0  ;;  %v525_v16 = vrot.slane %v494_v5, 1 }
  0xed   :  { %401 = vst [vmem:[#allocation3 + $0x40] sm:$0xff] %v385_v19  ;;  %v3213_v27 = vpack.c.bf16 %v385_v19, %v3206_v9  ;;  %v386_v28 = vmax.f32 %v378_v21, 0.0  ;;  %v510_v30 = vrot.slane %v385_v19, 1  ;;  %v379_v32 = vadd.f32 %v368_v61, %v359_v24 }
  0xee   :  { %v360_v33 = vadd.f32 %v348_v25, %v247_v22  ;;  %v350_v34 = vpop.f32.mrf.mxu0  ;;  %v434_v9 = vsel %vm431_vm2, %v432_v49, %v433_v51  ;;  %v437_v18 = vsel %vm431_vm2, %v435_v62, %v436_v63  ;;  %v527_v24 = vrot.slane %v495_v12, 1 }
  0xef   :  { %402 = vst [vmem:[#allocation3 + $0x78] sm:$0xff] %v386_v28  ;;  %v3216_v37 = vpack.c.bf16 %v386_v28, %v3209_v14  ;;  %v361_v38 = vadd.f32 %v350_v34, %v249_v26  ;;  %v3218_v41 = vmax.f32 %v379_v32, 0.0  ;;  %v513_v46 = vrot.slane %v386_v28, 1  ;;  %v413_v14 = vld [vmem:[#allocation3 + $0x28] sm:$0x80] }
  0xf0   :  { %v484_v39 = vld [vmem:[#allocation3 + $0x10] sm:$0xfe]  ;;  %v380_v42 = vadd.f32 %v372_v1, %v360_v33  ;;  %v352_v43 = vpop.f32.mrf.mxu0  ;;  %v516_v53 = vsel %vm508_vm1, %v510_v30, %v515_v31  ;;  %v442_v25 = vrot.slane %v413_v14, 7  ;;  %v414_v28 = vld [vmem:[#allocation3 + $0x48] sm:$0x80] }
  0xf1   :  { %v509_v44 = vrot.slane %v484_v39, 1  ;;  %v381_v47 = vadd.f32 %v368_v61, %v361_v38  ;;  %v362_v48 = vadd.f32 %v352_v43, %v251_v35  ;;  %403 = vst [vmem:[#allocation3 + $0x50] sm:$0xff] %v3218_v41  ;;  %v518_v4 = vsel %vm508_vm1, %v513_v46, %v517_v40 }
  0xf2   :  { %v485_v52 = vld [vmem:[#allocation3 + $0x30] sm:$0xfe]  ;;  %v388_v55 = vmax.f32 %v380_v42, 0.0  ;;  %v443_v26 = vrot.slane %v3218_v41, 7  ;;  %v445_v36 = vrot.slane %v414_v28, 7 }
  0xf3   :  { %v512_v56 = vrot.slane %v485_v52, 1  ;;  %v511_v58 = vsel %vm508_vm1, %v509_v44, %v510_v30  ;;  %v389_v59 = vmax.f32 %v381_v47, 0.0  ;;  %v382_v60 = vadd.f32 %v372_v1, %v362_v48 }
  0xf4   :  { %v411_v61 = vld [vmem:[#allocation3 + $0x40] sm:$0x7f]  ;;  %v3225_v0 = vpack.c.bf16 %v516_v53, %v511_v58  ;;  %404 = vst [vmem:[#allocation3 + $0x60] sm:$0xff] %v388_v55  ;;  %v446_v38 = vrot.slane %v388_v55, 7  ;;  %v444_v42 = vsel %vm431_vm2, %v442_v25, %v443_v26 }
  0xf5   :  { %v438_v2 = vrot.slane %v411_v61, 7  ;;  %v514_v3 = vsel %vm508_vm1, %v512_v56, %v513_v46  ;;  %405 = vst [vmem:[#allocation3 + $0x68] sm:$0xff] %v389_v59  ;;  %v3230_v6 = vpack.c.bf16 %v389_v59, %v3218_v41  ;;  %v390_v8 = vmax.f32 %v382_v60, 0.0 }
  0xf6   :  { %v412_v7 = vld [vmem:[#allocation3 + $0x78] sm:$0x7f]  ;;  %v3232_v1 = vpack.c.bf16 %v518_v4, %v514_v3  ;;  %v520_v15 = vrot.slane %v389_v59, 1  ;;  %v447_v47 = vsel %vm431_vm2, %v445_v36, %v446_v38 }
  0xf7   :  { %v439_v10 = vsel %vm431_vm2, %v433_v51, %v438_v2  ;;  %v440_v11 = vrot.slane %v412_v7, 7  ;;  %406 = vst [vmem:[#allocation3 + $0x38] sm:$0xff] %v390_v8  ;;  %v3238_v17 = vpack.c.bf16 %v390_v8, %v388_v55  ;;  %v523_v23 = vrot.slane %v390_v8, 1 }
  0xf8   :  { %v3236_v13 = vpack.c.bf16 %v439_v10, %v434_v9  ;;  %v490_v20 = vld [vmem:[#allocation3 + $0x50] sm:$0xfe]  ;;  %v526_v33 = vsel %vm508_vm1, %v520_v15, %v525_v16 }
  0xf9   :  { %v441_v19 = vsel %vm431_vm2, %v436_v63, %v440_v11  ;;  %v519_v22 = vrot.slane %v490_v20, 1  ;;  %v528_v40 = vsel %vm508_vm1, %v523_v23, %v527_v24 }
  0xfa   :  { %v3242_v21 = vpack.c.bf16 %v441_v19, %v437_v18 }
  0xfb   :  { %v491_v29 = vld [vmem:[#allocation3 + $0x60] sm:$0xfe]  ;;  %v521_v32 = vsel %vm508_vm1, %v519_v22, %v520_v15 }
  0xfc   :  { %v522_v30 = vrot.slane %v491_v29, 1  ;;  %v417_v31 = vld [vmem:[#allocation3 + $0x68] sm:$0x7f]  ;;  %v3247_v35 = vpack.c.bf16 %v526_v33, %v521_v32 }
  0xfd   :  { %v448_v34 = vrot.slane %v417_v31, 7 }
  0xfe   :  { %v524_v39 = vsel %vm508_vm1, %v522_v30, %v523_v23  ;;  %v418_v43 = vld [vmem:[#allocation3 + $0x38] sm:$0x7f] }
  0xff   :  { %v449_v41 = vsel %vm431_vm2, %v443_v26, %v448_v34  ;;  %v3253_v44 = vpack.c.bf16 %v528_v40, %v524_v39  ;;  %v450_v46 = vrot.slane %v418_v43, 7 }
 0x100   :  { %v3255_v45 = vpack.c.bf16 %v449_v41, %v444_v42 }
 0x101   :  { %v451_v48 = vsel %vm431_vm2, %v446_v38, %v450_v46 }
 0x102   :  { %v3259_v49 = vpack.c.bf16 %v451_v48, %v447_v47 }
 0x103   :  { %3058 = dma.done.wait [#allocation6], 24576 }
 0x104   :  { %3059 = vsyncadd [#allocation6], 4294942720  ;;  %1791 = vmatprep.mubr.bf16.mxu1 %v3242_v21  ;;  %1844 = vmatprep.mubr.bf16.mxu0 %v3216_v37  ;;  %v2730_v51 = vld [vmem:[#allocation5 + $0xe4] ss:$16 sps:$4 sm:$0xff]   ;;  %v2734_v53 = vld [vmem:[#allocation5 + $0xe0] ss:$16 sps:$4 sm:$0xff]  }
 0x105   :  { %v2732_v52 = vld [vmem:[#allocation5 + $0x2e4] ss:$16 sps:$4 sm:$0xff]   ;;  %1759 = vmatprep.subr.bf16.mxu1 %v2730_v51  ;;  %v2735_v55 = vld [vmem:[#allocation5 + $0x2e0] ss:$16 sps:$4 sm:$0xff]   ;;  %vm2228_vm3 = vcmask 1041409   ;;  %s3065_s22 = smov [#allocation7]  }
 0x106   :  { %1812 = vmatprep.subr.bf16.mxu0 %v2732_v52  ;;  %v2736_v56 = vld [vmem:[#allocation5 + $0xc4] ss:$16 sps:$4 sm:$0xff]   ;;  %1760 = vmatpush1.bf16.msra.mxu1 %v2734_v53  ;;  %v2740_v59 = vld [vmem:[#allocation5 + $0xc0] ss:$16 sps:$4 sm:$0xff]   ;;  %s2385_s23 = sshll.u32 %s3065_s22, 4  ;;  %vm2377_vm4 = vcmask 74752   ;;  %s2386_s23 = int_to_ptr.vmem [resolvable:$true] %s2385_s23 }
 0x107   :  { %1813 = vmatpush1.bf16.msra.mxu0 %v2735_v55  ;;  %v2738_v58 = vld [vmem:[#allocation5 + $0x2c4] ss:$16 sps:$4 sm:$0xff]   ;;  %1761 = vmatprep.subr.bf16.mxu1 %v2736_v56  ;;  %v2741_v60 = vld [vmem:[#allocation5 + $0x2c0] ss:$16 sps:$4 sm:$0xff]   ;;  %s3038_s24 = scalar_lea.vmem %s2386_s23, 32  ;;  %p3043_p6 = scmp.lt.s32.totalorder %s2386_s23, %s2386_s23 }
 0x108   :  { %1814 = vmatprep.subr.bf16.mxu0 %v2738_v58  ;;  %v2742_v62 = vld [vmem:[#allocation5 + $0xa4] ss:$16 sps:$4 sm:$0xff]   ;;  %v2746_v61 = vld [vmem:[#allocation5 + $0xa0] ss:$16 sps:$4 sm:$0xff]   ;;  %p3039_p5 = scmp.ne.s32.totalorder %s2386_s23, %s3038_s24  ;;  %p3044_p7 = scmp.lt.s32.totalorder %s3038_s24, %s3038_s24 }
 0x109   :  { %v2744_v63 = vld [vmem:[#allocation5 + $0x2a4] ss:$16 sps:$4 sm:$0xff]   ;;  %v2747_v2 = vld [vmem:[#allocation5 + $0x2a0] ss:$16 sps:$4 sm:$0xff]  }
 0x10a   :  { %1762 = vmatpush1.bf16.msra.mxu1 %v2740_v59  ;;  %v2748_v3 = vld [vmem:[#allocation5 + $0x84] ss:$16 sps:$4 sm:$0xff]   ;;  %v2752_v5 = vld [vmem:[#allocation5 + $0x80] ss:$16 sps:$4 sm:$0xff]   ;;  %p3045_p8 = por %p3044_p7, %p3043_p6 }
 0x10b   :  { %1815 = vmatpush1.bf16.msra.mxu0 %v2741_v60  ;;  %1763 = vmatprep.subr.bf16.mxu1 %v2742_v62  ;;  %v2750_v4 = vld [vmem:[#allocation5 + $0x284] ss:$16 sps:$4 sm:$0xff]   ;;  %v2753_v7 = vld [vmem:[#allocation5 + $0x280] ss:$16 sps:$4 sm:$0xff]  }
 0x10c   :  { %1816 = vmatprep.subr.bf16.mxu0 %v2744_v63  ;;  %v2754_v8 = vld [vmem:[#allocation5 + $0x64] ss:$16 sps:$4 sm:$0xff]   ;;  %v2758_v10 = vld [vmem:[#allocation5 + $0x60] ss:$16 sps:$4 sm:$0xff]   ;;  %p3046_p9 = pnand %p3045_p8, %p3039_p5 }
 0x10d   :  { %v2756_v9 = vld [vmem:[#allocation5 + $0x264] ss:$16 sps:$4 sm:$0xff]   ;;  %v2759_v11 = vld [vmem:[#allocation5 + $0x260] ss:$16 sps:$4 sm:$0xff]  }
 0x10e   :  { %1764 = vmatpush1.bf16.msra.mxu1 %v2746_v61  ;;  %v2760_v12 = vld [vmem:[#allocation5 + $0x44] ss:$16 sps:$4 sm:$0xff]   ;;  %v2764_v15 = vld [vmem:[#allocation5 + $0x40] ss:$16 sps:$4 sm:$0xff]  }
 0x10f   :  { %1817 = vmatpush1.bf16.msra.mxu0 %v2747_v2  ;;  %1765 = vmatprep.subr.bf16.mxu1 %v2748_v3  ;;  %v2762_v14 = vld [vmem:[#allocation5 + $0x244] ss:$16 sps:$4 sm:$0xff]   ;;  %v2765_v16 = vld [vmem:[#allocation5 + $0x240] ss:$16 sps:$4 sm:$0xff]  }
 0x110   :  { %1818 = vmatprep.subr.bf16.mxu0 %v2750_v4  ;;  %v2766_v18 = vld [vmem:[#allocation5 + $0x24] ss:$16 sps:$4 sm:$0xff]   ;;  %v2770_v20 = vld [vmem:[#allocation5 + $0x20] ss:$16 sps:$4 sm:$0xff]  }
 0x111   :  { %v2768_v19 = vld [vmem:[#allocation5 + $0x224] ss:$16 sps:$4 sm:$0xff]   ;;  %v2771_v22 = vld [vmem:[#allocation5 + $0x220] ss:$16 sps:$4 sm:$0xff]  }
 0x112   :  { %1766 = vmatpush1.bf16.msra.mxu1 %v2752_v5  ;;  %v2772_v23 = vld [vmem:[#allocation5 + $0x4] ss:$16 sps:$4 sm:$0xff]   ;;  %v2776_v25 = vld [vmem:[#allocation5] ss:$16 sps:$4 sm:$0xff]  }
 0x113   :  { %1819 = vmatpush1.bf16.msra.mxu0 %v2753_v7  ;;  %1767 = vmatprep.subr.bf16.mxu1 %v2754_v8  ;;  %v2774_v24 = vld [vmem:[#allocation5 + $0x204] ss:$16 sps:$4 sm:$0xff]   ;;  %v2777_v26 = vld [vmem:[#allocation5 + $0x200] ss:$16 sps:$4 sm:$0xff]   ;;  %v2831_v8 = vld [vmem:[#allocation5 + $0xec] ss:$16 sps:$4 sm:$0xff]  }
 0x114   :  { %1820 = vmatprep.subr.bf16.mxu0 %v2756_v9  ;;  %v2778_v28 = vld [vmem:[#allocation5 + $0x1e4] ss:$16 sps:$4 sm:$0xff]   ;;  %v2782_v30 = vld [vmem:[#allocation5 + $0x1e0] ss:$16 sps:$4 sm:$0xff]  }
 0x115   :  { %v2780_v29 = vld [vmem:[#allocation5 + $0x3e4] ss:$16 sps:$4 sm:$0xff]   ;;  %v2783_v31 = vld [vmem:[#allocation5 + $0x3e0] ss:$16 sps:$4 sm:$0xff]  }
 0x116   :  { %1768 = vmatpush1.bf16.msra.mxu1 %v2758_v10  ;;  %v2784_v32 = vld [vmem:[#allocation5 + $0x1c4] ss:$16 sps:$4 sm:$0xff]   ;;  %v2788_v34 = vld [vmem:[#allocation5 + $0x1c0] ss:$16 sps:$4 sm:$0xff]   ;;  %v2829_v10 = vld [vmem:[#allocation5 + $0xe8] ss:$16 sps:$4 sm:$0xff]  }
 0x117   :  { %1821 = vmatpush1.bf16.msra.mxu0 %v2759_v11  ;;  %1769 = vmatprep.subr.bf16.mxu1 %v2760_v12  ;;  %v2786_v33 = vld [vmem:[#allocation5 + $0x3c4] ss:$16 sps:$4 sm:$0xff]   ;;  %v2789_v36 = vld [vmem:[#allocation5 + $0x3c0] ss:$16 sps:$4 sm:$0xff]   ;;  %v2837_v12 = vld [vmem:[#allocation5 + $0xcc] ss:$16 sps:$4 sm:$0xff]  }
 0x118   :  { %1822 = vmatprep.subr.bf16.mxu0 %v2762_v14  ;;  %v2790_v38 = vld [vmem:[#allocation5 + $0x1a4] ss:$16 sps:$4 sm:$0xff]   ;;  %v2794_v40 = vld [vmem:[#allocation5 + $0x1a0] ss:$16 sps:$4 sm:$0xff]  }
 0x119   :  { %v2792_v39 = vld [vmem:[#allocation5 + $0x3a4] ss:$16 sps:$4 sm:$0xff]   ;;  %v2795_v42 = vld [vmem:[#allocation5 + $0x3a0] ss:$16 sps:$4 sm:$0xff]  }
 0x11a   :  { %1770 = vmatpush1.bf16.msra.mxu1 %v2764_v15  ;;  %v2796_v41 = vld [vmem:[#allocation5 + $0x184] ss:$16 sps:$4 sm:$0xff]   ;;  %v2800_v46 = vld [vmem:[#allocation5 + $0x180] ss:$16 sps:$4 sm:$0xff]   ;;  %v2835_v15 = vld [vmem:[#allocation5 + $0xc8] ss:$16 sps:$4 sm:$0xff]  }
 0x11b   :  { %1823 = vmatpush1.bf16.msra.mxu0 %v2765_v16  ;;  %1771 = vmatprep.subr.bf16.mxu1 %v2766_v18  ;;  %v2798_v43 = vld [vmem:[#allocation5 + $0x384] ss:$16 sps:$4 sm:$0xff]   ;;  %v2801_v47 = vld [vmem:[#allocation5 + $0x380] ss:$16 sps:$4 sm:$0xff]   ;;  %v2843_v18 = vld [vmem:[#allocation5 + $0xac] ss:$16 sps:$4 sm:$0xff]  }
 0x11c   :  { %1824 = vmatprep.subr.bf16.mxu0 %v2768_v19  ;;  %v2802_v48 = vld [vmem:[#allocation5 + $0x164] ss:$16 sps:$4 sm:$0xff]   ;;  %v2806_v52 = vld [vmem:[#allocation5 + $0x160] ss:$16 sps:$4 sm:$0xff]  }
 0x11d   :  { %v2804_v51 = vld [vmem:[#allocation5 + $0x364] ss:$16 sps:$4 sm:$0xff]   ;;  %v2807_v53 = vld [vmem:[#allocation5 + $0x360] ss:$16 sps:$4 sm:$0xff]  }
 0x11e   :  { %1772 = vmatpush1.bf16.msra.mxu1 %v2770_v20  ;;  %v2808_v55 = vld [vmem:[#allocation5 + $0x144] ss:$16 sps:$4 sm:$0xff]   ;;  %v2812_v58 = vld [vmem:[#allocation5 + $0x140] ss:$16 sps:$4 sm:$0xff]   ;;  %v2841_v20 = vld [vmem:[#allocation5 + $0xa8] ss:$16 sps:$4 sm:$0xff]  }
 0x11f   :  { %1825 = vmatpush1.bf16.msra.mxu0 %v2771_v22  ;;  %1773 = vmatprep.subr.bf16.mxu1 %v2772_v23  ;;  %v2810_v56 = vld [vmem:[#allocation5 + $0x344] ss:$16 sps:$4 sm:$0xff]   ;;  %v2813_v59 = vld [vmem:[#allocation5 + $0x340] ss:$16 sps:$4 sm:$0xff]   ;;  %v2849_v23 = vld [vmem:[#allocation5 + $0x8c] ss:$16 sps:$4 sm:$0xff]  }
 0x120   :  { %1826 = vmatprep.subr.bf16.mxu0 %v2774_v24  ;;  %v2814_v60 = vld [vmem:[#allocation5 + $0x124] ss:$16 sps:$4 sm:$0xff]   ;;  %v2818_v63 = vld [vmem:[#allocation5 + $0x120] ss:$16 sps:$4 sm:$0xff]  }
 0x121   :  { %v2816_v62 = vld [vmem:[#allocation5 + $0x324] ss:$16 sps:$4 sm:$0xff]   ;;  %v2819_v61 = vld [vmem:[#allocation5 + $0x320] ss:$16 sps:$4 sm:$0xff]  }
 0x122   :  { %1774 = vmatpush1.bf16.msra.mxu1 %v2776_v25  ;;  %v2820_v2 = vld [vmem:[#allocation5 + $0x104] ss:$16 sps:$4 sm:$0xff]   ;;  %v2824_v4 = vld [vmem:[#allocation5 + $0x100] ss:$16 sps:$4 sm:$0xff]   ;;  %v2847_v25 = vld [vmem:[#allocation5 + $0x88] ss:$16 sps:$4 sm:$0xff]  }
 0x123   :  { %1827 = vmatpush1.bf16.msra.mxu0 %v2777_v26  ;;  %1775 = vmatprep.subr.bf16.mxu1 %v2778_v28  ;;  %v2822_v3 = vld [vmem:[#allocation5 + $0x304] ss:$16 sps:$4 sm:$0xff]   ;;  %v2825_v5 = vld [vmem:[#allocation5 + $0x300] ss:$16 sps:$4 sm:$0xff]   ;;  %v2855_v28 = vld [vmem:[#allocation5 + $0x6c] ss:$16 sps:$4 sm:$0xff]  }
 0x124   :  { %1828 = vmatprep.subr.bf16.mxu0 %v2780_v29  ;;  %v2828_v7 = vld [vmem:[#allocation5 + $0x4e4] ss:$16 sps:$4 sm:$0xff]   ;;  %v2826_v9 = vld [vmem:[#allocation5 + $0x4e0] ss:$16 sps:$4 sm:$0xff]  }
 0x125   :  { %v2834_v11 = vld [vmem:[#allocation5 + $0x4c4] ss:$16 sps:$4 sm:$0xff]   ;;  %v2832_v14 = vld [vmem:[#allocation5 + $0x4c0] ss:$16 sps:$4 sm:$0xff]  }
 0x126   :  { %1776 = vmatpush2.bf16.msra.mxu1 %v2782_v30  ;;  %v2840_v16 = vld [vmem:[#allocation5 + $0x4a4] ss:$16 sps:$4 sm:$0xff]   ;;  %v2838_v19 = vld [vmem:[#allocation5 + $0x4a0] ss:$16 sps:$4 sm:$0xff]   ;;  %v2853_v30 = vld [vmem:[#allocation5 + $0x68] ss:$16 sps:$4 sm:$0xff]  }
 0x127   :  { %1829 = vmatpush2.bf16.msra.mxu0 %v2783_v31  ;;  %1777 = vmatprep.subr.bf16.mxu1 %v2784_v32  ;;  %v2846_v22 = vld [vmem:[#allocation5 + $0x484] ss:$16 sps:$4 sm:$0xff]   ;;  %v2844_v24 = vld [vmem:[#allocation5 + $0x480] ss:$16 sps:$4 sm:$0xff]   ;;  %v2861_v32 = vld [vmem:[#allocation5 + $0x4c] ss:$16 sps:$4 sm:$0xff]  }
 0x128   :  { %1830 = vmatprep.subr.bf16.mxu0 %v2786_v33  ;;  %v2852_v26 = vld [vmem:[#allocation5 + $0x464] ss:$16 sps:$4 sm:$0xff]   ;;  %v2850_v29 = vld [vmem:[#allocation5 + $0x460] ss:$16 sps:$4 sm:$0xff]  }
 0x129   :  { %v2858_v31 = vld [vmem:[#allocation5 + $0x444] ss:$16 sps:$4 sm:$0xff]   ;;  %v2856_v33 = vld [vmem:[#allocation5 + $0x440] ss:$16 sps:$4 sm:$0xff]  }
 0x12a   :  { %1778 = vmatpush2.bf16.msra.mxu1 %v2788_v34  ;;  %v2859_v34 = vld [vmem:[#allocation5 + $0x48] ss:$16 sps:$4 sm:$0xff]  }
 0x12b   :  { %1831 = vmatpush2.bf16.msra.mxu0 %v2789_v36  ;;  %1779 = vmatprep.subr.bf16.mxu1 %v2790_v38  ;;  %v2864_v36 = vld [vmem:[#allocation5 + $0x424] ss:$16 sps:$4 sm:$0xff]   ;;  %v2867_v38 = vld [vmem:[#allocation5 + $0x2c] ss:$16 sps:$4 sm:$0xff]  }
 0x12c   :  { %1832 = vmatprep.subr.bf16.mxu0 %v2792_v39  ;;  %v2862_v39 = vld [vmem:[#allocation5 + $0x420] ss:$16 sps:$4 sm:$0xff]  }
 0x12e   :  { %1780 = vmatpush2.bf16.msra.mxu1 %v2794_v40  ;;  %v2865_v40 = vld [vmem:[#allocation5 + $0x28] ss:$16 sps:$4 sm:$0xff]  }
 0x12f   :  { %1833 = vmatpush2.bf16.msra.mxu0 %v2795_v42  ;;  %1781 = vmatprep.subr.bf16.mxu1 %v2796_v41  ;;  %v2873_v42 = vld [vmem:[#allocation5 + $0xc] ss:$16 sps:$4 sm:$0xff]   ;;  %v2868_v41 = vld [vmem:[#allocation5 + $0x400] ss:$16 sps:$4 sm:$0xff]  }
 0x130   :  { %1834 = vmatprep.subr.bf16.mxu0 %v2798_v43  ;;  %v2871_v43 = vld [vmem:[#allocation5 + $0x8] ss:$16 sps:$4 sm:$0xff]  }
 0x132   :  { %1782 = vmatpush2.bf16.msra.mxu1 %v2800_v46  ;;  %v2876_v46 = vld [vmem:[#allocation5 + $0x5e4] ss:$16 sps:$4 sm:$0xff]  }
 0x133   :  { %1835 = vmatpush2.bf16.msra.mxu0 %v2801_v47  ;;  %1783 = vmatprep.subr.bf16.mxu1 %v2802_v48  ;;  %v2879_v47 = vld [vmem:[#allocation5 + $0x1ec] ss:$16 sps:$4 sm:$0xff]   ;;  %v2874_v48 = vld [vmem:[#allocation5 + $0x5e0] ss:$16 sps:$4 sm:$0xff]  }
 0x134   :  { %1836 = vmatprep.subr.bf16.mxu0 %v2804_v51  ;;  %v2877_v51 = vld [vmem:[#allocation5 + $0x1e8] ss:$16 sps:$4 sm:$0xff]  }
 0x136   :  { %1784 = vmatpush2.bf16.msra.mxu1 %v2806_v52  ;;  %v2882_v52 = vld [vmem:[#allocation5 + $0x5c4] ss:$16 sps:$4 sm:$0xff]  }
 0x137   :  { %1837 = vmatpush2.bf16.msra.mxu0 %v2807_v53  ;;  %1785 = vmatprep.subr.bf16.mxu1 %v2808_v55  ;;  %v2885_v53 = vld [vmem:[#allocation5 + $0x1cc] ss:$16 sps:$4 sm:$0xff]   ;;  %v2880_v55 = vld [vmem:[#allocation5 + $0x5c0] ss:$16 sps:$4 sm:$0xff]  }
 0x138   :  { %1838 = vmatprep.subr.bf16.mxu0 %v2810_v56  ;;  %v2883_v56 = vld [vmem:[#allocation5 + $0x1c8] ss:$16 sps:$4 sm:$0xff]  }
 0x13a   :  { %1786 = vmatpush2.bf16.msra.mxu1 %v2812_v58  ;;  %v2888_v58 = vld [vmem:[#allocation5 + $0x5a4] ss:$16 sps:$4 sm:$0xff]  }
 0x13b   :  { %1839 = vmatpush2.bf16.msra.mxu0 %v2813_v59  ;;  %1787 = vmatprep.subr.bf16.mxu1 %v2814_v60  ;;  %v2891_v59 = vld [vmem:[#allocation5 + $0x1ac] ss:$16 sps:$4 sm:$0xff]   ;;  %v2886_v60 = vld [vmem:[#allocation5 + $0x5a0] ss:$16 sps:$4 sm:$0xff]  }
 0x13c   :  { %1840 = vmatprep.subr.bf16.mxu0 %v2816_v62  ;;  %v2889_v62 = vld [vmem:[#allocation5 + $0x1a8] ss:$16 sps:$4 sm:$0xff]  }
 0x13e   :  { %1788 = vmatpush2.bf16.msra.mxu1 %v2818_v63  ;;  %v2894_v63 = vld [vmem:[#allocation5 + $0x584] ss:$16 sps:$4 sm:$0xff]  }
 0x13f   :  { %1841 = vmatpush2.bf16.msra.mxu0 %v2819_v61  ;;  %1789 = vmatprep.subr.bf16.mxu1 %v2820_v2  ;;  %v2897_v61 = vld [vmem:[#allocation5 + $0x18c] ss:$16 sps:$4 sm:$0xff]   ;;  %v2892_v2 = vld [vmem:[#allocation5 + $0x580] ss:$16 sps:$4 sm:$0xff]  }
 0x140   :  { %1842 = vmatprep.subr.bf16.mxu0 %v2822_v3  ;;  %v2895_v3 = vld [vmem:[#allocation5 + $0x188] ss:$16 sps:$4 sm:$0xff]  }
 0x142   :  { %1790 = vmatpush2.bf16.msra.mxu1 %v2824_v4  ;;  %v2900_v4 = vld [vmem:[#allocation5 + $0x564] ss:$16 sps:$4 sm:$0xff]  }
 0x143   :  { %1843 = vmatpush2.bf16.msra.mxu0 %v2825_v5  ;;  %1865 = vmatprep.subr.bf16.mxu1 %v2828_v7  ;;  %v2903_v5 = vld [vmem:[#allocation5 + $0x16c] ss:$16 sps:$4 sm:$0xff]   ;;  %v2898_v7 = vld [vmem:[#allocation5 + $0x560] ss:$16 sps:$4 sm:$0xff]  }
 0x144   :  { %1918 = vmatprep.subr.bf16.mxu0 %v2831_v8  ;;  %v2901_v8 = vld [vmem:[#allocation5 + $0x168] ss:$16 sps:$4 sm:$0xff]  }
 0x145   :  { %1792 = vmatmul.mubr.bf16.vlgmr.msra.gmra.mxu1 %v3236_v13 }
 0x146   :  { %1845 = vmatmul.mubr.bf16.vlgmr.msra.gmra.mxu0 %v3213_v27  ;;  %1866 = vmatpush1.bf16.msra.mxu1 %v2826_v9  ;;  %v2906_v9 = vld [vmem:[#allocation5 + $0x544] ss:$16 sps:$4 sm:$0xff]  }
 0x147   :  { %1919 = vmatpush1.bf16.msra.mxu0 %v2829_v10  ;;  %1867 = vmatprep.subr.bf16.mxu1 %v2834_v11  ;;  %v2909_v10 = vld [vmem:[#allocation5 + $0x14c] ss:$16 sps:$4 sm:$0xff]   ;;  %v2904_v11 = vld [vmem:[#allocation5 + $0x540] ss:$16 sps:$4 sm:$0xff]  }
 0x148   :  { %1920 = vmatprep.subr.bf16.mxu0 %v2837_v12  ;;  %1801 = vmatprep.mubr.bf16.mxu1 %v3259_v49  ;;  %v2907_v12 = vld [vmem:[#allocation5 + $0x148] ss:$16 sps:$4 sm:$0xff]  }
 0x149   :  { %1854 = vmatprep.mubr.bf16.mxu0 %v3238_v17 }
 0x14a   :  { %1868 = vmatpush1.bf16.msra.mxu1 %v2832_v14  ;;  %v2912_v14 = vld [vmem:[#allocation5 + $0x524] ss:$16 sps:$4 sm:$0xff]  }
 0x14b   :  { %1921 = vmatpush1.bf16.msra.mxu0 %v2835_v15  ;;  %1869 = vmatprep.subr.bf16.mxu1 %v2840_v16  ;;  %v2915_v15 = vld [vmem:[#allocation5 + $0x12c] ss:$16 sps:$4 sm:$0xff]   ;;  %v2910_v16 = vld [vmem:[#allocation5 + $0x520] ss:$16 sps:$4 sm:$0xff]  }
 0x14c   :  { %1922 = vmatprep.subr.bf16.mxu0 %v2843_v18  ;;  %v2913_v18 = vld [vmem:[#allocation5 + $0x128] ss:$16 sps:$4 sm:$0xff]  }
 0x14d   :  { %1802 = vmatmul.mubr.bf16.gmra.mxu1 %v3255_v45 }
 0x14e   :  { %1855 = vmatmul.mubr.bf16.gmra.mxu0 %v3230_v6  ;;  %1870 = vmatpush1.bf16.msra.mxu1 %v2838_v19  ;;  %v2918_v19 = vld [vmem:[#allocation5 + $0x504] ss:$16 sps:$4 sm:$0xff]  }
 0x14f   :  { %1923 = vmatpush1.bf16.msra.mxu0 %v2841_v20  ;;  %1871 = vmatprep.subr.bf16.mxu1 %v2846_v22  ;;  %v2921_v20 = vld [vmem:[#allocation5 + $0x10c] ss:$16 sps:$4 sm:$0xff]   ;;  %v2916_v22 = vld [vmem:[#allocation5 + $0x500] ss:$16 sps:$4 sm:$0xff]  }
 0x150   :  { %1924 = vmatprep.subr.bf16.mxu0 %v2849_v23  ;;  %1897 = vmatprep.mubr.bf16.mxu1 %v3232_v1  ;;  %v2919_v23 = vld [vmem:[#allocation5 + $0x108] ss:$16 sps:$4 sm:$0xff]  }
 0x151   :  { %1950 = vmatprep.mubr.bf16.mxu0 %v3242_v21  ;;  %v2870_v21 = vld [vmem:[#allocation5 + $0x404] ss:$16 sps:$4 sm:$0xff]  }
 0x152   :  { %1872 = vmatpush1.bf16.msra.mxu1 %v2844_v24  ;;  %v2924_v24 = vld [vmem:[#allocation5 + $0x2ec] ss:$16 sps:$4 sm:$0xff]  }
 0x153   :  { %1925 = vmatpush1.bf16.msra.mxu0 %v2847_v25  ;;  %1873 = vmatprep.subr.bf16.mxu1 %v2852_v26  ;;  %v2927_v25 = vld [vmem:[#allocation5 + $0x4ec] ss:$16 sps:$4 sm:$0xff]   ;;  %v2922_v26 = vld [vmem:[#allocation5 + $0x2e8] ss:$16 sps:$4 sm:$0xff]  }
 0x154   :  { %1926 = vmatprep.subr.bf16.mxu0 %v2855_v28  ;;  %v2925_v28 = vld [vmem:[#allocation5 + $0x4e8] ss:$16 sps:$4 sm:$0xff]  }
 0x156   :  { %1874 = vmatpush1.bf16.msra.mxu1 %v2850_v29  ;;  %v2930_v29 = vld [vmem:[#allocation5 + $0x2cc] ss:$16 sps:$4 sm:$0xff]  }
 0x157   :  { %1927 = vmatpush1.bf16.msra.mxu0 %v2853_v30  ;;  %1875 = vmatprep.subr.bf16.mxu1 %v2858_v31  ;;  %v2933_v30 = vld [vmem:[#allocation5 + $0x4cc] ss:$16 sps:$4 sm:$0xff]   ;;  %v2928_v31 = vld [vmem:[#allocation5 + $0x2c8] ss:$16 sps:$4 sm:$0xff]  }
 0x158   :  { %1928 = vmatprep.subr.bf16.mxu0 %v2861_v32  ;;  %v2931_v32 = vld [vmem:[#allocation5 + $0x4c8] ss:$16 sps:$4 sm:$0xff]  }
 0x15a   :  { %1876 = vmatpush1.bf16.msra.mxu1 %v2856_v33  ;;  %v2936_v33 = vld [vmem:[#allocation5 + $0x2ac] ss:$16 sps:$4 sm:$0xff]  }
 0x15b   :  { %1929 = vmatpush1.bf16.msra.mxu0 %v2859_v34  ;;  %1877 = vmatprep.subr.bf16.mxu1 %v2864_v36  ;;  %v2939_v34 = vld [vmem:[#allocation5 + $0x4ac] ss:$16 sps:$4 sm:$0xff]   ;;  %v2934_v36 = vld [vmem:[#allocation5 + $0x2a8] ss:$16 sps:$4 sm:$0xff]  }
 0x15c   :  { %1930 = vmatprep.subr.bf16.mxu0 %v2867_v38  ;;  %v2937_v38 = vld [vmem:[#allocation5 + $0x4a8] ss:$16 sps:$4 sm:$0xff]  }
 0x15e   :  { %1878 = vmatpush1.bf16.msra.mxu1 %v2862_v39  ;;  %v2942_v39 = vld [vmem:[#allocation5 + $0x28c] ss:$16 sps:$4 sm:$0xff]  }
 0x15f   :  { %1931 = vmatpush1.bf16.msra.mxu0 %v2865_v40  ;;  %1879 = vmatprep.subr.bf16.mxu1 %v2870_v21  ;;  %v2940_v40 = vld [vmem:[#allocation5 + $0x288] ss:$16 sps:$4 sm:$0xff]  }
 0x160   :  { %1932 = vmatprep.subr.bf16.mxu0 %v2873_v42  ;;  %v2943_v21 = vld [vmem:[#allocation5 + $0x488] ss:$16 sps:$4 sm:$0xff]   ;;  %v2948_v42 = vld [vmem:[#allocation5 + $0x26c] ss:$16 sps:$4 sm:$0xff]  }
 0x162   :  { %1880 = vmatpush1.bf16.msra.mxu1 %v2868_v41  ;;  %v2946_v41 = vld [vmem:[#allocation5 + $0x268] ss:$16 sps:$4 sm:$0xff]  }
 0x163   :  { %1933 = vmatpush1.bf16.msra.mxu0 %v2871_v43  ;;  %1881 = vmatprep.subr.bf16.mxu1 %v2876_v46  ;;  %v2949_v43 = vld [vmem:[#allocation5 + $0x468] ss:$16 sps:$4 sm:$0xff]   ;;  %v2954_v46 = vld [vmem:[#allocation5 + $0x24c] ss:$16 sps:$4 sm:$0xff]  }
 0x164   :  { %1934 = vmatprep.subr.bf16.mxu0 %v2879_v47  ;;  %v2952_v47 = vld [vmem:[#allocation5 + $0x248] ss:$16 sps:$4 sm:$0xff]  }
 0x166   :  { %1882 = vmatpush2.bf16.msra.mxu1 %v2874_v48  ;;  %v2955_v48 = vld [vmem:[#allocation5 + $0x448] ss:$16 sps:$4 sm:$0xff]  }
 0x167   :  { %1935 = vmatpush2.bf16.msra.mxu0 %v2877_v51  ;;  %1883 = vmatprep.subr.bf16.mxu1 %v2882_v52  ;;  %v2960_v51 = vld [vmem:[#allocation5 + $0x22c] ss:$16 sps:$4 sm:$0xff]  }
 0x168   :  { %1936 = vmatprep.subr.bf16.mxu0 %v2885_v53  ;;  %v2963_v52 = vld [vmem:[#allocation5 + $0x42c] ss:$16 sps:$4 sm:$0xff]  }
 0x169   :  { %v2966_v53 = vld [vmem:[#allocation5 + $0x20c] ss:$16 sps:$4 sm:$0xff]  }
 0x16a   :  { %1884 = vmatpush2.bf16.msra.mxu1 %v2880_v55  ;;  %v2969_v55 = vld [vmem:[#allocation5 + $0x40c] ss:$16 sps:$4 sm:$0xff]  }
 0x16b   :  { %1937 = vmatpush2.bf16.msra.mxu0 %v2883_v56  ;;  %1885 = vmatprep.subr.bf16.mxu1 %v2888_v58  ;;  %v2964_v56 = vld [vmem:[#allocation5 + $0x208] ss:$16 sps:$4 sm:$0xff]  }
 0x16c   :  { %1938 = vmatprep.subr.bf16.mxu0 %v2891_v59  ;;  %v2967_v58 = vld [vmem:[#allocation5 + $0x408] ss:$16 sps:$4 sm:$0xff]   ;;  %v2972_v59 = vld [vmem:[#allocation5 + $0x3ec] ss:$16 sps:$4 sm:$0xff]  }
 0x16e   :  { %1886 = vmatpush2.bf16.msra.mxu1 %v2886_v60  ;;  %v2975_v60 = vld [vmem:[#allocation5 + $0x5ec] ss:$16 sps:$4 sm:$0xff]  }
 0x16f   :  { %1939 = vmatpush2.bf16.msra.mxu0 %v2889_v62  ;;  %1887 = vmatprep.subr.bf16.mxu1 %v2894_v63  ;;  %v2970_v62 = vld [vmem:[#allocation5 + $0x3e8] ss:$16 sps:$4 sm:$0xff]  }
 0x170   :  { %1940 = vmatprep.subr.bf16.mxu0 %v2897_v61  ;;  %v2973_v63 = vld [vmem:[#allocation5 + $0x5e8] ss:$16 sps:$4 sm:$0xff]   ;;  %v2978_v61 = vld [vmem:[#allocation5 + $0x3cc] ss:$16 sps:$4 sm:$0xff]  }
 0x172   :  { %1888 = vmatpush2.bf16.msra.mxu1 %v2892_v2  ;;  %v2981_v2 = vld [vmem:[#allocation5 + $0x5cc] ss:$16 sps:$4 sm:$0xff]  }
 0x173   :  { %1941 = vmatpush2.bf16.msra.mxu0 %v2895_v3  ;;  %1889 = vmatprep.subr.bf16.mxu1 %v2900_v4  ;;  %v2976_v3 = vld [vmem:[#allocation5 + $0x3c8] ss:$16 sps:$4 sm:$0xff]  }
 0x174   :  { %1942 = vmatprep.subr.bf16.mxu0 %v2903_v5  ;;  %v2979_v4 = vld [vmem:[#allocation5 + $0x5c8] ss:$16 sps:$4 sm:$0xff]   ;;  %v2984_v5 = vld [vmem:[#allocation5 + $0x3ac] ss:$16 sps:$4 sm:$0xff]  }
 0x176   :  { %1890 = vmatpush2.bf16.msra.mxu1 %v2898_v7  ;;  %v2987_v7 = vld [vmem:[#allocation5 + $0x5ac] ss:$16 sps:$4 sm:$0xff]  }
 0x177   :  { %1943 = vmatpush2.bf16.msra.mxu0 %v2901_v8  ;;  %1891 = vmatprep.subr.bf16.mxu1 %v2906_v9  ;;  %v2982_v8 = vld [vmem:[#allocation5 + $0x3a8] ss:$16 sps:$4 sm:$0xff]  }
 0x178   :  { %1944 = vmatprep.subr.bf16.mxu0 %v2909_v10  ;;  %v2985_v9 = vld [vmem:[#allocation5 + $0x5a8] ss:$16 sps:$4 sm:$0xff]   ;;  %v2990_v10 = vld [vmem:[#allocation5 + $0x38c] ss:$16 sps:$4 sm:$0xff]  }
 0x17a   :  { %1892 = vmatpush2.bf16.msra.mxu1 %v2904_v11  ;;  %v2993_v11 = vld [vmem:[#allocation5 + $0x58c] ss:$16 sps:$4 sm:$0xff]  }
 0x17b   :  { %1945 = vmatpush2.bf16.msra.mxu0 %v2907_v12  ;;  %1893 = vmatprep.subr.bf16.mxu1 %v2912_v14  ;;  %v2988_v12 = vld [vmem:[#allocation5 + $0x388] ss:$16 sps:$4 sm:$0xff]  }
 0x17c   :  { %1946 = vmatprep.subr.bf16.mxu0 %v2915_v15  ;;  %v2991_v14 = vld [vmem:[#allocation5 + $0x588] ss:$16 sps:$4 sm:$0xff]   ;;  %v2996_v15 = vld [vmem:[#allocation5 + $0x36c] ss:$16 sps:$4 sm:$0xff]  }
 0x17e   :  { %1894 = vmatpush2.bf16.msra.mxu1 %v2910_v16  ;;  %v2999_v16 = vld [vmem:[#allocation5 + $0x56c] ss:$16 sps:$4 sm:$0xff]  }
 0x17f   :  { %1947 = vmatpush2.bf16.msra.mxu0 %v2913_v18  ;;  %1895 = vmatprep.subr.bf16.mxu1 %v2918_v19  ;;  %v2994_v18 = vld [vmem:[#allocation5 + $0x368] ss:$16 sps:$4 sm:$0xff]  }
 0x180   :  { %1948 = vmatprep.subr.bf16.mxu0 %v2921_v20  ;;  %v2997_v19 = vld [vmem:[#allocation5 + $0x568] ss:$16 sps:$4 sm:$0xff]   ;;  %v3002_v20 = vld [vmem:[#allocation5 + $0x34c] ss:$16 sps:$4 sm:$0xff]  }
 0x182   :  { %1896 = vmatpush2.bf16.msra.mxu1 %v2916_v22  ;;  %v3005_v22 = vld [vmem:[#allocation5 + $0x54c] ss:$16 sps:$4 sm:$0xff]  }
 0x183   :  { %1949 = vmatpush2.bf16.msra.mxu0 %v2919_v23  ;;  %1971 = vmatprep.subr.bf16.mxu1 %v2924_v24  ;;  %v3000_v23 = vld [vmem:[#allocation5 + $0x348] ss:$16 sps:$4 sm:$0xff]  }
 0x184   :  { %2024 = vmatprep.subr.bf16.mxu0 %v2927_v25  ;;  %v3003_v24 = vld [vmem:[#allocation5 + $0x548] ss:$16 sps:$4 sm:$0xff]   ;;  %v3008_v25 = vld [vmem:[#allocation5 + $0x32c] ss:$16 sps:$4 sm:$0xff]  }
 0x185   :  { %1898 = vmatmul.mubr.bf16.vlgmr.msra.gmra.mxu1 %v3225_v0 }
 0x186   :  { %1951 = vmatmul.mubr.bf16.vlgmr.msra.gmra.mxu0 %v3236_v13  ;;  %1972 = vmatpush1.bf16.msra.mxu1 %v2922_v26  ;;  %v2945_v13 = vld [vmem:[#allocation5 + $0x48c] ss:$16 sps:$4 sm:$0xff]  }
 0x187   :  { %2025 = vmatpush1.bf16.msra.mxu0 %v2925_v28  ;;  %1973 = vmatprep.subr.bf16.mxu1 %v2930_v29  ;;  %v3011_v26 = vld [vmem:[#allocation5 + $0x52c] ss:$16 sps:$4 sm:$0xff]   ;;  %v3006_v28 = vld [vmem:[#allocation5 + $0x328] ss:$16 sps:$4 sm:$0xff]  }
 0x188   :  { %2026 = vmatprep.subr.bf16.mxu0 %v2933_v30  ;;  %1907 = vmatprep.mubr.bf16.mxu1 %v3253_v44  ;;  %v3009_v29 = vld [vmem:[#allocation5 + $0x528] ss:$16 sps:$4 sm:$0xff]   ;;  %v3014_v30 = vld [vmem:[#allocation5 + $0x30c] ss:$16 sps:$4 sm:$0xff]  }
 0x189   :  { %1960 = vmatprep.mubr.bf16.mxu0 %v3259_v49  ;;  %v2951_v49 = vld [vmem:[#allocation5 + $0x46c] ss:$16 sps:$4 sm:$0xff]  }
 0x18a   :  { %1974 = vmatpush1.bf16.msra.mxu1 %v2928_v31  ;;  %v3017_v31 = vld [vmem:[#allocation5 + $0x50c] ss:$16 sps:$4 sm:$0xff]  }
 0x18b   :  { %2027 = vmatpush1.bf16.msra.mxu0 %v2931_v32  ;;  %1975 = vmatprep.subr.bf16.mxu1 %v2936_v33  ;;  %v3012_v32 = vld [vmem:[#allocation5 + $0x308] ss:$16 sps:$4 sm:$0xff]  }
 0x18c   :  { %2028 = vmatprep.subr.bf16.mxu0 %v2939_v34  ;;  %v3015_v33 = vld [vmem:[#allocation5 + $0x508] ss:$16 sps:$4 sm:$0xff]  }
 0x18d   :  { %1908 = vmatmul.mubr.bf16.gmra.mxu1 %v3247_v35  ;;  %v2180_v34 = vld [vmem:[%s3507_s5 + $0xf8] sm:$0xff] }
 0x18e   :  { %1961 = vmatmul.mubr.bf16.gmra.mxu0 %v3255_v45  ;;  %1976 = vmatpush1.bf16.msra.mxu1 %v2934_v36  ;;  %v2957_v45 = vld [vmem:[#allocation5 + $0x44c] ss:$16 sps:$4 sm:$0xff]  }
 0x18f   :  { %2029 = vmatpush1.bf16.msra.mxu0 %v2937_v38  ;;  %1977 = vmatprep.subr.bf16.mxu1 %v2942_v39  ;;  %v2164_v36 = vld [vmem:[%s3507_s5 + $0x78] sm:$0xff]  ;;  %v2177_v38 = vld [vmem:[%s3507_s5 + $0xe0] sm:$0xff] }
 0x190   :  { %2030 = vmatprep.subr.bf16.mxu0 %v2945_v13  ;;  %2003 = vmatprep.mubr.bf16.mxu1 %v3216_v37  ;;  %v2958_v37 = vld [vmem:[#allocation5 + $0x228] ss:$16 sps:$4 sm:$0xff]   ;;  %v2161_v39 = vld [vmem:[%s3507_s5 + $0x60] sm:$0xff] }
 0x191   :  { %2056 = vmatprep.mubr.bf16.mxu0 %v3232_v1  ;;  %v2961_v1 = vld [vmem:[#allocation5 + $0x428] ss:$16 sps:$4 sm:$0xff]  }
 0x192   :  { %1978 = vmatpush1.bf16.msra.mxu1 %v2940_v40  ;;  %v2176_v13 = vld [vmem:[%s3507_s5 + $0xd8] sm:$0xff]  ;;  %v2159_v40 = vld [vmem:[%s3507_s5 + $0x50] sm:$0xff] }
 0x193   :  { %2031 = vmatpush1.bf16.msra.mxu0 %v2943_v21  ;;  %1979 = vmatprep.subr.bf16.mxu1 %v2948_v42  ;;  %v2174_v21 = vld [vmem:[%s3507_s5 + $0xc8] sm:$0xff] }
 0x194   :  { %2032 = vmatprep.subr.bf16.mxu0 %v2951_v49  ;;  %v2158_v42 = vld [vmem:[%s3507_s5 + $0x48] sm:$0xff]  ;;  %v2173_v49 = vld [vmem:[%s3507_s5 + $0xc0] sm:$0xff] }
 0x196   :  { %1980 = vmatpush1.bf16.msra.mxu1 %v2946_v41  ;;  %v2157_v41 = vld [vmem:[%s3507_s5 + $0x40] sm:$0xff] }
 0x197   :  { %2033 = vmatpush1.bf16.msra.mxu0 %v2949_v43  ;;  %1981 = vmatprep.subr.bf16.mxu1 %v2954_v46  ;;  %v2172_v43 = vld [vmem:[%s3507_s5 + $0xb8] sm:$0xff] }
 0x198   :  { %2034 = vmatprep.subr.bf16.mxu0 %v2957_v45  ;;  %v2156_v46 = vld [vmem:[%s3507_s5 + $0x38] sm:$0xff]  ;;  %v2171_v45 = vld [vmem:[%s3507_s5 + $0xb0] sm:$0xff] }
 0x19a   :  { %1982 = vmatpush1.bf16.msra.mxu1 %v2952_v47  ;;  %v2155_v47 = vld [vmem:[%s3507_s5 + $0x30] sm:$0xff] }
 0x19b   :  { %2035 = vmatpush1.bf16.msra.mxu0 %v2955_v48  ;;  %1983 = vmatprep.subr.bf16.mxu1 %v2960_v51  ;;  %v2170_v48 = vld [vmem:[%s3507_s5 + $0xa8] sm:$0xff] }
 0x19c   :  { %2036 = vmatprep.subr.bf16.mxu0 %v2963_v52  ;;  %v2154_v51 = vld [vmem:[%s3507_s5 + $0x28] sm:$0xff]  ;;  %v2169_v52 = vld [vmem:[%s3507_s5 + $0xa0] sm:$0xff] }
 0x19e   :  { %1984 = vmatpush1.bf16.msra.mxu1 %v2958_v37  ;;  %v2153_v37 = vld [vmem:[%s3507_s5 + $0x20] sm:$0xff] }
 0x19f   :  { %2037 = vmatpush1.bf16.msra.mxu0 %v2961_v1  ;;  %1985 = vmatprep.subr.bf16.mxu1 %v2966_v53  ;;  %v2168_v1 = vld [vmem:[%s3507_s5 + $0x98] sm:$0xff] }
 0x1a0   :  { %2038 = vmatprep.subr.bf16.mxu0 %v2969_v55  ;;  %v2152_v53 = vld [vmem:[%s3507_s5 + $0x18] sm:$0xff]  ;;  %v2167_v55 = vld [vmem:[%s3507_s5 + $0x90] sm:$0xff] }
 0x1a2   :  { %1986 = vmatpush1.bf16.msra.mxu1 %v2964_v56  ;;  %v2151_v56 = vld [vmem:[%s3507_s5 + $0x10] sm:$0xff] }
 0x1a3   :  { %2039 = vmatpush1.bf16.msra.mxu0 %v2967_v58  ;;  %1987 = vmatprep.subr.bf16.mxu1 %v2972_v59  ;;  %v2166_v58 = vld [vmem:[%s3507_s5 + $0x88] sm:$0xff] }
 0x1a4   :  { %2040 = vmatprep.subr.bf16.mxu0 %v2975_v60  ;;  %v2150_v59 = vld [vmem:[%s3507_s5 + $0x8] sm:$0xff]  ;;  %v2165_v60 = vld [vmem:[%s3507_s5 + $0x80] sm:$0xff] }
 0x1a6   :  { %1988 = vmatpush2.bf16.msra.mxu1 %v2970_v62  ;;  %v2149_v62 = vld [vmem:[%s3507_s5] sm:$0xff] }
 0x1a7   :  { %2041 = vmatpush2.bf16.msra.mxu0 %v2973_v63  ;;  %1989 = vmatprep.subr.bf16.mxu1 %v2978_v61  ;;  %v2212_v63 = vld [vmem:[%s3507_s5 + $0x1f8] sm:$0xff] }
 0x1a8   :  { %2042 = vmatprep.subr.bf16.mxu0 %v2981_v2  ;;  %v2196_v61 = vld [vmem:[%s3507_s5 + $0x178] sm:$0xff]  ;;  %v2211_v2 = vld [vmem:[%s3507_s5 + $0x1f0] sm:$0xff] }
 0x1aa   :  { %1990 = vmatpush2.bf16.msra.mxu1 %v2976_v3  ;;  %v2195_v3 = vld [vmem:[%s3507_s5 + $0x170] sm:$0xff] }
 0x1ab   :  { %2043 = vmatpush2.bf16.msra.mxu0 %v2979_v4  ;;  %1991 = vmatprep.subr.bf16.mxu1 %v2984_v5  ;;  %v2210_v4 = vld [vmem:[%s3507_s5 + $0x1e8] sm:$0xff] }
 0x1ac   :  { %2044 = vmatprep.subr.bf16.mxu0 %v2987_v7  ;;  %v2194_v5 = vld [vmem:[%s3507_s5 + $0x168] sm:$0xff]  ;;  %v2209_v7 = vld [vmem:[%s3507_s5 + $0x1e0] sm:$0xff] }
 0x1ae   :  { %1992 = vmatpush2.bf16.msra.mxu1 %v2982_v8  ;;  %v2193_v8 = vld [vmem:[%s3507_s5 + $0x160] sm:$0xff] }
 0x1af   :  { %2045 = vmatpush2.bf16.msra.mxu0 %v2985_v9  ;;  %1993 = vmatprep.subr.bf16.mxu1 %v2990_v10  ;;  %v2208_v9 = vld [vmem:[%s3507_s5 + $0x1d8] sm:$0xff] }
 0x1b0   :  { %2046 = vmatprep.subr.bf16.mxu0 %v2993_v11  ;;  %v2192_v10 = vld [vmem:[%s3507_s5 + $0x158] sm:$0xff]  ;;  %v2207_v11 = vld [vmem:[%s3507_s5 + $0x1d0] sm:$0xff] }
 0x1b2   :  { %1994 = vmatpush2.bf16.msra.mxu1 %v2988_v12  ;;  %v2191_v12 = vld [vmem:[%s3507_s5 + $0x150] sm:$0xff] }
 0x1b3   :  { %2047 = vmatpush2.bf16.msra.mxu0 %v2991_v14  ;;  %1995 = vmatprep.subr.bf16.mxu1 %v2996_v15  ;;  %v2206_v14 = vld [vmem:[%s3507_s5 + $0x1c8] sm:$0xff] }
 0x1b4   :  { %2048 = vmatprep.subr.bf16.mxu0 %v2999_v16  ;;  %v2190_v15 = vld [vmem:[%s3507_s5 + $0x148] sm:$0xff]  ;;  %v2205_v16 = vld [vmem:[%s3507_s5 + $0x1c0] sm:$0xff] }
 0x1b6   :  { %1996 = vmatpush2.bf16.msra.mxu1 %v2994_v18  ;;  %v2189_v18 = vld [vmem:[%s3507_s5 + $0x140] sm:$0xff] }
 0x1b7   :  { %2049 = vmatpush2.bf16.msra.mxu0 %v2997_v19  ;;  %1997 = vmatprep.subr.bf16.mxu1 %v3002_v20  ;;  %v2204_v19 = vld [vmem:[%s3507_s5 + $0x1b8] sm:$0xff] }
 0x1b8   :  { %2050 = vmatprep.subr.bf16.mxu0 %v3005_v22  ;;  %v2188_v20 = vld [vmem:[%s3507_s5 + $0x138] sm:$0xff]  ;;  %v2203_v22 = vld [vmem:[%s3507_s5 + $0x1b0] sm:$0xff] }
 0x1ba   :  { %1998 = vmatpush2.bf16.msra.mxu1 %v3000_v23  ;;  %v2187_v23 = vld [vmem:[%s3507_s5 + $0x130] sm:$0xff] }
 0x1bb   :  { %2051 = vmatpush2.bf16.msra.mxu0 %v3003_v24  ;;  %1999 = vmatprep.subr.bf16.mxu1 %v3008_v25  ;;  %v2202_v24 = vld [vmem:[%s3507_s5 + $0x1a8] sm:$0xff] }
 0x1bc   :  { %2052 = vmatprep.subr.bf16.mxu0 %v3011_v26  ;;  %v2186_v25 = vld [vmem:[%s3507_s5 + $0x128] sm:$0xff]  ;;  %v2201_v26 = vld [vmem:[%s3507_s5 + $0x1a0] sm:$0xff] }
 0x1be   :  { %2000 = vmatpush2.bf16.msra.mxu1 %v3006_v28  ;;  %v2185_v28 = vld [vmem:[%s3507_s5 + $0x120] sm:$0xff] }
 0x1bf   :  { %2053 = vmatpush2.bf16.msra.mxu0 %v3009_v29  ;;  %2001 = vmatprep.subr.bf16.mxu1 %v3014_v30  ;;  %v2200_v29 = vld [vmem:[%s3507_s5 + $0x198] sm:$0xff] }
 0x1c0   :  { %2054 = vmatprep.subr.bf16.mxu0 %v3017_v31  ;;  %v2184_v30 = vld [vmem:[%s3507_s5 + $0x118] sm:$0xff]  ;;  %v2199_v31 = vld [vmem:[%s3507_s5 + $0x190] sm:$0xff] }
 0x1c2   :  { %2002 = vmatpush2.bf16.msra.mxu1 %v3012_v32  ;;  %v2183_v32 = vld [vmem:[%s3507_s5 + $0x110] sm:$0xff] }
 0x1c3   :  { %2055 = vmatpush2.bf16.msra.mxu0 %v3015_v33  ;;  %2629 = vmatprep.subr.mxu1 %v2180_v34  ;;  %v2198_v33 = vld [vmem:[%s3507_s5 + $0x188] sm:$0xff] }
 0x1c4   :  { %2664 = vmatprep.subr.mxu0 %v2212_v63  ;;  %v2182_v34 = vld [vmem:[%s3507_s5 + $0x108] sm:$0xff] }
 0x1c5   :  { %2004 = vmatmul.mubr.bf16.vlgmr.msra.gmra.mxu1 %v3213_v27  ;;  %v2179_v27 = vld [vmem:[%s3507_s5 + $0xf0] sm:$0xff] }
 0x1c6   :  { %2057 = vmatmul.mubr.bf16.vlgmr.msra.gmra.mxu0 %v3225_v0  ;;  %2013 = vmatprep.mubr.bf16.mxu1 %v3238_v17  ;;  %v2163_v0 = vld [vmem:[%s3507_s5 + $0x70] sm:$0xff]  ;;  %v2178_v17 = vld [vmem:[%s3507_s5 + $0xe8] sm:$0xff] }
 0x1c7   :  { %2066 = vmatprep.mubr.bf16.mxu0 %v3253_v44  ;;  %2630 = vmatpush3.msra.mxu1 %v2164_v36  ;;  %v2162_v44 = vld [vmem:[%s3507_s5 + $0x68] sm:$0xff]  ;;  %v2197_v36 = vld [vmem:[%s3507_s5 + $0x180] sm:$0xff] }
 0x1c8   :  { %2631 = vmatprep.subr.mxu1 %v2179_v27  ;;  %2665 = vmatpush3.msra.mxu0 %v2196_v61  ;;  %v2181_v27 = vld [vmem:[%s3507_s5 + $0x100] sm:$0xff] }
 0x1c9   :  { %2632 = vmatpush3.msra.mxu1 %v2163_v0  ;;  %2666 = vmatprep.subr.mxu0 %v2211_v2 }
 0x1ca   :  { %2633 = vmatprep.subr.mxu1 %v2178_v17  ;;  %2667 = vmatpush3.msra.mxu0 %v2195_v3 }
 0x1cb   :  { %2634 = vmatpush3.msra.mxu1 %v2162_v44  ;;  %2668 = vmatprep.subr.mxu0 %v2210_v4 }
 0x1cc   :  { %2635 = vmatprep.subr.mxu1 %v2177_v38  ;;  %2669 = vmatpush3.msra.mxu0 %v2194_v5 }
 0x1cd   :  { %2014 = vmatmul.mubr.bf16.gmra.mxu1 %v3230_v6  ;;  %v2160_v6 = vld [vmem:[%s3507_s5 + $0x58] sm:$0xff]  ;;  %2670 = vmatprep.subr.mxu0 %v2209_v7 }
 0x1ce   :  { %2067 = vmatmul.mubr.bf16.gmra.mxu0 %v3247_v35  ;;  %2636 = vmatpush3.msra.mxu1 %v2161_v39  ;;  %v2175_v35 = vld [vmem:[%s3507_s5 + $0xd0] sm:$0xff] }
 0x1cf   :  { %2637 = vmatprep.subr.mxu1 %v2176_v13  ;;  %2671 = vmatpush3.msra.mxu0 %v2193_v8 }
 0x1d0   :  { %2638 = vmatpush3.msra.mxu1 %v2160_v6  ;;  %2672 = vmatprep.subr.mxu0 %v2208_v9 }
 0x1d1   :  { %2639 = vmatprep.subr.mxu1 %v2175_v35  ;;  %2673 = vmatpush3.msra.mxu0 %v2192_v10  ;;  %v3480_v35 = vld [vmem:[%s3506_s4] sm:$0xf] }
 0x1d2   :  { %2640 = vmatpush3.msra.mxu1 %v2159_v40  ;;  %2674 = vmatprep.subr.mxu0 %v2207_v11 }
 0x1d3   :  { %2641 = vmatprep.subr.mxu1 %v2174_v21  ;;  %2675 = vmatpush3.msra.mxu0 %v2191_v12 }
 0x1d4   :  { %2642 = vmatpush3.msra.mxu1 %v2158_v42  ;;  %2676 = vmatprep.subr.mxu0 %v2206_v14  ;;  %v782_v42 = vrot.slane %v3480_v35, %v367_v54 }
 0x1d5   :  { %2643 = vmatprep.subr.mxu1 %v2173_v49  ;;  %2677 = vmatpush3.msra.mxu0 %v2190_v15 }
 0x1d6   :  { %2644 = vmatpush3.msra.mxu1 %v2157_v41  ;;  %2678 = vmatprep.subr.mxu0 %v2205_v16  ;;  %v786_v41 = vrot.slane %v3480_v35, %v371_v57 }
 0x1d7   :  { %2645 = vmatprep.subr.mxu1 %v2172_v43  ;;  %2679 = vmatpush3.msra.mxu0 %v2189_v18 }
 0x1d8   :  { %2646 = vmatpush3.msra.mxu1 %v2156_v46  ;;  %2680 = vmatprep.subr.mxu0 %v2204_v19 }
 0x1d9   :  { %2647 = vmatprep.subr.mxu1 %v2171_v45  ;;  %2681 = vmatpush3.msra.mxu0 %v2188_v20 }
 0x1da   :  { %2648 = vmatpush3.msra.mxu1 %v2155_v47  ;;  %2682 = vmatprep.subr.mxu0 %v2203_v22 }
 0x1db   :  { %2649 = vmatprep.subr.mxu1 %v2170_v48  ;;  %2683 = vmatpush3.msra.mxu0 %v2187_v23 }
 0x1dc   :  { %2650 = vmatpush3.msra.mxu1 %v2154_v51  ;;  %2684 = vmatprep.subr.mxu0 %v2202_v24 }
 0x1dd   :  { %2651 = vmatprep.subr.mxu1 %v2169_v52  ;;  %2685 = vmatpush3.msra.mxu0 %v2186_v25 }
 0x1de   :  { %2652 = vmatpush3.msra.mxu1 %v2153_v37  ;;  %2686 = vmatprep.subr.mxu0 %v2201_v26 }
 0x1df   :  { %2653 = vmatprep.subr.mxu1 %v2168_v1  ;;  %2687 = vmatpush3.msra.mxu0 %v2185_v28 }
 0x1e0   :  { %2654 = vmatpush3.msra.mxu1 %v2152_v53  ;;  %2688 = vmatprep.subr.mxu0 %v2200_v29 }
 0x1e1   :  { %2655 = vmatprep.subr.mxu1 %v2167_v55  ;;  %2689 = vmatpush3.msra.mxu0 %v2184_v30 }
 0x1e2   :  { %2656 = vmatpush3.msra.mxu1 %v2151_v56  ;;  %2690 = vmatprep.subr.mxu0 %v2199_v31 }
 0x1e3   :  { %2657 = vmatprep.subr.mxu1 %v2166_v58  ;;  %2691 = vmatpush3.msra.mxu0 %v2183_v32 }
 0x1e4   :  { %2658 = vmatpush3.msra.mxu1 %v2150_v59  ;;  %2692 = vmatprep.subr.mxu0 %v2198_v33 }
 0x1e5   :  { %2659 = vmatprep.subr.mxu1 %v2165_v60  ;;  %2693 = vmatpush3.msra.mxu0 %v2182_v34 }
 0x1e6   :  { %2660 = vmatpush3.msra.mxu1 %v2149_v62  ;;  %2694 = vmatprep.subr.mxu0 %v2197_v36 }
 0x1e7   :  { %2695 = vmatpush3.msra.mxu0 %v2181_v27 }
 0x205   :  { %v1793_v0 = vpop.f32.mrf.mxu1 }
 0x206   :  { %v1846_v38 = vpop.f32.mrf.mxu0  ;;  %v1794_v46 = vadd.f32 %v1793_v0, %v782_v42 }
 0x207   :  { %v1795_v17 = vpop.f32.mrf.mxu1 }
 0x208   :  { %v1848_v6 = vpop.f32.mrf.mxu0  ;;  %v1796_v48 = vadd.f32 %v1795_v17, %v786_v41  ;;  %v1847_v37 = vadd.f32 %v1846_v38, %v1794_v46 }
 0x209   :  { %v1797_v44 = vpop.f32.mrf.mxu1 }
 0x20a   :  { %v1850_v21 = vpop.f32.mrf.mxu0  ;;  %v1798_v51 = vadd.f32 %v1797_v44, %v782_v42  ;;  %v1849_v56 = vadd.f32 %v1848_v6, %v1796_v48 }
 0x20b   :  { %v1799_v39 = vpop.f32.mrf.mxu1 }
 0x20c   :  { %v1852_v43 = vpop.f32.mrf.mxu0  ;;  %v1800_v1 = vadd.f32 %v1799_v39, %v786_v41  ;;  %v1851_v58 = vadd.f32 %v1850_v21, %v1798_v51 }
 0x20d   :  { %v1803_v13 = vpop.f32.mrf.mxu1 }
 0x20e   :  { %v1856_v45 = vpop.f32.mrf.mxu0  ;;  %v1804_v54 = vadd.f32 %v1803_v13, %v782_v42  ;;  %v1853_v62 = vadd.f32 %v1852_v43, %v1800_v1 }
 0x20f   :  { %v1805_v40 = vpop.f32.mrf.mxu1 }
 0x210   :  { %v1858_v53 = vpop.f32.mrf.mxu0  ;;  %v1806_v57 = vadd.f32 %v1805_v40, %v786_v41  ;;  %v1857_v9 = vadd.f32 %v1856_v45, %v1804_v54 }
 0x211   :  { %v1807_v49 = vpop.f32.mrf.mxu1 }
 0x212   :  { %v1860_v2 = vpop.f32.mrf.mxu0  ;;  %v1808_v4 = vadd.f32 %v1807_v49, %v782_v42  ;;  %v1859_v19 = vadd.f32 %v1858_v53, %v1806_v57 }
 0x213   :  { %v1809_v47 = vpop.f32.mrf.mxu1 }
 0x214   :  { %v1810_v11 = vadd.f32 %v1809_v47, %v786_v41  ;;  %v1862_v16 = vpop.f32.mrf.mxu0  ;;  %v1861_v20 = vadd.f32 %v1860_v2, %v1808_v4  ;;  %v789_v2 = vsub.s32 2, %v3195_v50 }
 0x216   :  { %v1863_v26 = vadd.f32 %v1862_v16, %v1810_v11 }
 0x245   :  { %v1899_v52 = vpop.f32.mrf.mxu1 }
 0x246   :  { %v1900_v59 = vadd.f32 %v1899_v52, %v1847_v37  ;;  %v1952_v54 = vpop.f32.mrf.mxu0 }
 0x247   :  { %v1901_v55 = vpop.f32.mrf.mxu1 }
 0x248   :  { %v1902_v63 = vadd.f32 %v1901_v55, %v1849_v56  ;;  %v2077_v5 = vmax.f32 %v1900_v59, 0.0 }
 0x249   :  { %v1903_v60 = vpop.f32.mrf.mxu1 }
 0x24a   :  { %v1904_v61 = vadd.f32 %v1903_v60, %v1851_v58  ;;  %v2078_v12 = vmax.f32 %v1902_v63, 0.0  ;;  %v1954_v60 = vpop.f32.mrf.mxu0 }
 0x24b   :  { %v1905_v3 = vpop.f32.mrf.mxu1 }
 0x24c   :  { %v2081_v7 = vmax.f32 %v1904_v61, 0.0  ;;  %v1906_v8 = vadd.f32 %v1905_v3, %v1853_v62  ;;  %v1956_v62 = vpop.f32.mrf.mxu0  ;;  %v793_v3 = vsub.s32 3, %v3195_v50 }
 0x24d   :  { %v1909_v10 = vpop.f32.mrf.mxu1 }
 0x24e   :  { %v2093_v14 = vadd.f32 %v2081_v7, %v2077_v5  ;;  %v2082_v15 = vmax.f32 %v1906_v8, 0.0  ;;  %v1910_v23 = vadd.f32 %v1909_v10, %v1857_v9  ;;  %v1958_v63 = vpop.f32.mrf.mxu0  ;;  %v790_v5 = vrot.slane %v3480_v35, %v789_v2 }
 0x24f   :  { %v1911_v18 = vpop.f32.mrf.mxu1  ;;  %v794_v7 = vrot.slane %v3480_v35, %v793_v3 }
 0x250   :  { %v2100_v22 = vadd.f32 %v2082_v15, %v2078_v12  ;;  %v2094_v24 = vrot.slane %v2093_v14, 4  ;;  %v1912_v29 = vadd.f32 %v1911_v18, %v1859_v19  ;;  %v2085_v33 = vmax.f32 %v1910_v23, 0.0  ;;  %v1962_v61 = vpop.f32.mrf.mxu0 }
 0x251   :  { %v1913_v25 = vpop.f32.mrf.mxu1  ;;  %v1953_v9 = vadd.f32 %v1952_v54, %v790_v5  ;;  %v1955_v12 = vadd.f32 %v1954_v60, %v794_v7  ;;  %v1957_v18 = vadd.f32 %v1956_v62, %v790_v5  ;;  %v1959_v23 = vadd.f32 %v1958_v63, %v794_v7 }
 0x252   :  { %v2101_v28 = vrot.slane %v2100_v22, 4  ;;  %v1914_v30 = vadd.f32 %v1913_v25, %v1861_v20  ;;  %v2095_v27 = vadd.f32 %v2094_v24, %v2093_v14  ;;  %v2086_v0 = vmax.f32 %v1912_v29, 0.0  ;;  %v1964_v57 = vpop.f32.mrf.mxu0 }
 0x253   :  { %v1915_v31 = vpop.f32.mrf.mxu1 }
 0x254   :  { %v2102_v32 = vadd.f32 %v2101_v28, %v2100_v22  ;;  %v2089_v34 = vmax.f32 %v1914_v30, 0.0  ;;  %v1916_v36 = vadd.f32 %v1915_v31, %v1863_v26  ;;  %v2096_v6 = vrot.slane %v2095_v27, 2  ;;  %v1966_v4 = vpop.f32.mrf.mxu0 }
 0x255   :  { %v1963_v30 = vadd.f32 %v1962_v61, %v790_v5 }
 0x256   :  { %v2121_v17 = vadd.f32 %v2089_v34, %v2085_v33  ;;  %v2090_v44 = vmax.f32 %v1916_v36, 0.0  ;;  %v2103_v38 = vrot.slane %v2102_v32, 2  ;;  %v2097_v43 = vadd.f32 %v2096_v6, %v2095_v27  ;;  %v1968_v8 = vpop.f32.mrf.mxu0 }
 0x257   :  { %v1965_v33 = vadd.f32 %v1964_v57, %v794_v7 }
 0x258   :  { %v2122_v39 = vrot.slane %v2121_v17, 4  ;;  %v2128_v13 = vadd.f32 %v2090_v44, %v2086_v0  ;;  %v2104_v42 = vadd.f32 %v2103_v38, %v2102_v32  ;;  %v2098_v52 = vrot.slane %v2097_v43, 1 }
 0x25a   :  { %v2123_v40 = vadd.f32 %v2122_v39, %v2121_v17  ;;  %v2129_v21 = vrot.slane %v2128_v13, 4  ;;  %v2105_v51 = vrot.slane %v2104_v42, 1  ;;  %v2099_v56 = vadd.f32 %v2098_v52, %v2097_v43 }
 0x25c   :  { %v2124_v49 = vrot.slane %v2123_v40, 2  ;;  %v2130_v41 = vadd.f32 %v2129_v21, %v2128_v13  ;;  %v2106_v53 = vadd.f32 %v2105_v51, %v2104_v42 }
 0x25e   :  { %v2125_v46 = vadd.f32 %v2124_v49, %v2123_v40  ;;  %v2131_v45 = vrot.slane %v2130_v41, 2  ;;  %v1967_v40 = vadd.f32 %v1966_v4, %v790_v5  ;;  %v1969_v49 = vadd.f32 %v1968_v8, %v794_v7 }
 0x260   :  { %v2126_v47 = vrot.slane %v2125_v46, 1  ;;  %v2132_v48 = vadd.f32 %v2131_v45, %v2130_v41 }
 0x262   :  { %v2133_v37 = vrot.slane %v2132_v48, 1  ;;  %v2127_v1 = vadd.f32 %v2126_v47, %v2125_v46 }
 0x264   :  { %v2134_v55 = vadd.f32 %v2133_v37, %v2132_v48  ;;  %v2229_v59 = vsel %vm2228_vm3, %v2127_v1, %v2099_v56 }
 0x266   :  { %v2230_v58 = vsel %vm2228_vm3, %v2134_v55, %v2106_v53 }
 0x267   :  { %2301 = vmatprep.mubr.f32.mxu1 %v2230_v58 }
 0x268   :  { %2302 = vmatmul.mubr.f32.vlgmr.msra.gmra.mxu1 %v2229_v59 }
 0x285   :  { %v2005_v10 = vpop.f32.mrf.mxu1 }
 0x286   :  { %v2058_v11 = vpop.f32.mrf.mxu0  ;;  %v2006_v14 = vadd.f32 %v2005_v10, %v1953_v9 }
 0x287   :  { %v2007_v15 = vpop.f32.mrf.mxu1 }
 0x288   :  { %v2060_v16 = vpop.f32.mrf.mxu0  ;;  %v2008_v19 = vadd.f32 %v2007_v15, %v1955_v12  ;;  %v2059_v24 = vadd.f32 %v2058_v11, %v2006_v14 }
 0x289   :  { %v2009_v20 = vpop.f32.mrf.mxu1 }
 0x28a   :  { %v2062_v22 = vpop.f32.mrf.mxu0  ;;  %v2010_v50 = vadd.f32 %v2009_v20, %v1957_v18  ;;  %v2061_v28 = vadd.f32 %v2060_v16, %v2008_v19  ;;  %v2079_v34 = vmax.f32 %v2059_v24, 0.0 }
 0x28b   :  { %v2011_v25 = vpop.f32.mrf.mxu1 }
 0x28c   :  { %v2064_v26 = vpop.f32.mrf.mxu0  ;;  %v2063_v29 = vadd.f32 %v2062_v22, %v2010_v50  ;;  %v2012_v35 = vadd.f32 %v2011_v25, %v1959_v23  ;;  %v2080_v38 = vmax.f32 %v2061_v28, 0.0 }
 0x28d   :  { %v2015_v31 = vpop.f32.mrf.mxu1 }
 0x28e   :  { %v2068_v32 = vpop.f32.mrf.mxu0  ;;  %v2083_v36 = vmax.f32 %v2063_v29, 0.0  ;;  %v2065_v27 = vadd.f32 %v2064_v26, %v2012_v35  ;;  %v2016_v0 = vadd.f32 %v2015_v31, %v1963_v30  ;;  %v2627_v29 = vld [vmem:[%s3508_s6] ss:$0 sm:$0xff] }
 0x28f   :  { %v2017_v17 = vpop.f32.mrf.mxu1 }
 0x290   :  { %v2070_v44 = vpop.f32.mrf.mxu0  ;;  %v2107_v39 = vadd.f32 %v2083_v36, %v2079_v34  ;;  %v2084_v13 = vmax.f32 %v2065_v27, 0.0  ;;  %v2018_v6 = vadd.f32 %v2017_v17, %v1965_v33  ;;  %v2069_v46 = vadd.f32 %v2068_v32, %v2016_v0 }
 0x291   :  { %v2019_v21 = vpop.f32.mrf.mxu1 }
 0x292   :  { %v2072_v42 = vpop.f32.mrf.mxu0  ;;  %v2114_v41 = vadd.f32 %v2084_v13, %v2080_v38  ;;  %v2108_v43 = vrot.slane %v2107_v39, 4  ;;  %v2020_v45 = vadd.f32 %v2019_v21, %v1967_v40  ;;  %v2071_v51 = vadd.f32 %v2070_v44, %v2018_v6 }
 0x293   :  { %v2021_v47 = vpop.f32.mrf.mxu1  ;;  %v2087_v58 = vmax.f32 %v2069_v46, 0.0 }
 0x294   :  { %v2115_v48 = vrot.slane %v2114_v41, 4  ;;  %v2022_v52 = vadd.f32 %v2021_v47, %v1969_v49  ;;  %v2073_v37 = vadd.f32 %v2072_v42, %v2020_v45  ;;  %v2074_v1 = vpop.f32.mrf.mxu0  ;;  %v2109_v56 = vadd.f32 %v2108_v43, %v2107_v39 }
 0x295   :  { %v2088_v54 = vmax.f32 %v2071_v51, 0.0 }
 0x296   :  { %v2116_v53 = vadd.f32 %v2115_v48, %v2114_v41  ;;  %v2075_v55 = vadd.f32 %v2074_v1, %v2022_v52  ;;  %v2091_v59 = vmax.f32 %v2073_v37, 0.0  ;;  %v2110_v57 = vrot.slane %v2109_v56, 2 }
 0x298   :  { %v2092_v60 = vmax.f32 %v2075_v55, 0.0  ;;  %v2135_v62 = vadd.f32 %v2091_v59, %v2087_v58  ;;  %v2117_v63 = vrot.slane %v2116_v53, 2  ;;  %v2111_v8 = vadd.f32 %v2110_v57, %v2109_v56 }
 0x29a   :  { %v2142_v61 = vadd.f32 %v2092_v60, %v2088_v54  ;;  %v2136_v2 = vrot.slane %v2135_v62, 4  ;;  %v2118_v5 = vadd.f32 %v2117_v63, %v2116_v53  ;;  %v2112_v15 = vrot.slane %v2111_v8, 1 }
 0x29c   :  { %v2143_v3 = vrot.slane %v2142_v61, 4  ;;  %v2137_v4 = vadd.f32 %v2136_v2, %v2135_v62  ;;  %v2119_v14 = vrot.slane %v2118_v5, 1  ;;  %v2113_v23 = vadd.f32 %v2112_v15, %v2111_v8 }
 0x29e   :  { %v2144_v7 = vadd.f32 %v2143_v3, %v2142_v61  ;;  %v2138_v9 = vrot.slane %v2137_v4, 2  ;;  %v2120_v20 = vadd.f32 %v2119_v14, %v2118_v5 }
 0x2a0   :  { %v2145_v10 = vrot.slane %v2144_v7, 2  ;;  %v2139_v11 = vadd.f32 %v2138_v9, %v2137_v4 }
 0x2a2   :  { %v2146_v12 = vadd.f32 %v2145_v10, %v2144_v7  ;;  %v2140_v16 = vrot.slane %v2139_v11, 1 }
 0x2a4   :  { %v2147_v18 = vrot.slane %v2146_v12, 1  ;;  %v2141_v19 = vadd.f32 %v2140_v16, %v2139_v11 }
 0x2a6   :  { %v2148_v22 = vadd.f32 %v2147_v18, %v2146_v12  ;;  %v2231_v50 = vsel %vm2228_vm3, %v2141_v19, %v2113_v23 }
 0x2a8   :  { %v2232_v24 = vsel %vm2228_vm3, %v2148_v22, %v2120_v20 }
 0x2a9   :  { %2371 = vmatprep.mubr.f32.mxu0 %v2232_v24 }
 0x2aa   :  { %2372 = vmatmul.mubr.f32.vlgmr.msra.gmra.mxu0 %v2231_v50 }
 0x328   :  { %v2661_v25 = vpop.f32.mrf.mxu1 }
 0x32a   :  { %v2662_v26 = vpop.f32.mrf.mxu1 }
 0x32b   :  { %v2663_v28 = vadd.f32 %v2662_v26, %v2661_v25 }
 0x32d   :  { %v2304_v31 = vadd.f32 %v2663_v28, %v2627_v29 }
 0x36a   :  { %v2696_v35 = vpop.f32.mrf.mxu0 }
 0x36c   :  { %v2697_v30 = vpop.f32.mrf.mxu0 }
 0x36d   :  { %v2698_v32 = vadd.f32 %v2697_v30, %v2696_v35 }
 0x36f   :  { %v2374_v33 = vadd.f32 %v2698_v32, %v2304_v31 }
 0x371   :  { %2378 = vst.msk [vmem:[#allocation7] sm:$0x3] %vm2377_vm4, %v2374_v33 }
 0x372   :  { %3049 = shalt.err (!%p3046_p9)
}
 0x373   :  { %2388 = dma.vmem_to_hbm [thread:$0]  %s2386_s23, 32, %s3509_s7, [#allocation8]  }
 0x374   :  { %3060 = dma.done.wait [#allocation8], 32  }
 0x375   :  { %3061 = vsyncadd [#allocation8], 4294967264 }
 0x376   :  { %2392 = vsyncpa [#allocation8], 1 }
 0x377   :  { %2393 = vsyncmov [#allocation6] }
 0x37a   :  { %s2394_s6 = vpop.sfrf %2393 }
 0x37b   :  { %p2628_p10 = scmp.ne.s32.totalorder %s2394_s6, 0 }
 0x37d   :  { %2398 = shalt.err (%p2628_p10)  }

</bundles_post_ra>
